<compile_context>
chip_gen: v7x
topology: tpu7x:2x2x1
jax: 0.10.0
libtpu: 0.0.40
codegen_flags: <defaults>
</compile_context>

<pallas_src>
import jax
import jax.numpy as jnp
from jax.experimental import pallas as pl
from jax.experimental.pallas import tpu as pltpu

# Config 'E' of torchvision VGG; features[:40] == everything up to (and
# including) the 4th MaxPool2d.
VGG19_CFG = [64, 64, "M", 128, 128, "M", 256, 256, 256, 256, "M",
             512, 512, 512, 512, "M"]

BN_EPS = 1e-5
_MAX_M_ROWS = 1024   # target rows (M) per MXU matmul chunk (keeps acc small)
_COUT_TILE = 256     # Cout tile (lane-dense; matches 2x256 MXU on v6e/v7x, use 128 on v5e)


# --------------------------------------------------------------------------
# Fused Conv3x3(pad=1) + BatchNorm(eval) + ReLU (+ optional fused MaxPool2x2)
# --------------------------------------------------------------------------
def _conv_body(x_ref, w_ref, s_ref, b_ref, o_ref, p_ref):
    # x_ref: (1, H+2, W+2, Cin)     zero-padded bf16 input tile (one image)
    # w_ref: (3, 3*Cin, TCout)      bf16 weights, kw taps packed along K
    # s_ref, b_ref: (1, TCout)      f32 folded BatchNorm scale / bias
    # o_ref: (1, H, W, TCout)       bf16 output tile
    # p_ref: (1, H//2, W//2, TCout) bf16 pooled output tile (or None)
    _, Hp, Wp, Cin = x_ref.shape
    H, W = Hp - 2, Wp - 2
    TC = o_ref.shape[-1]
    xp = x_ref[0]                                    # (H+2, W+2, Cin) bf16

    # 3 W-shifted staging buffers (kw = 0,1,2) packed along the contraction
    # dim -> ((H+2)*W, 3*Cin).  Replaces 9 sublane-shifted patch copies with 3
    # and triples the MXU K depth on the shallow-channel layers.
    xcat = jnp.concatenate(
        [xp[:, kw:kw + W, :].reshape((H + 2) * W, Cin) for kw in range(3)],
        axis=-1)

    # Row-chunk the M dimension so the f32 accumulator stays bounded even at
    # large resolutions (whole-image M would spill).
    if H * W <= _MAX_M_ROWS:
        rh_step = H
    else:
        rh_step = max(2, (_MAX_M_ROWS // W) // 2 * 2)   # even rows (pool-safe)

    for r0 in range(0, H, rh_step):
        rh = min(rh_step, H - r0)
        acc = jnp.zeros((rh * W, TC), jnp.float32)
        for kh in range(3):                           # kh taps: cheap leading-dim slices
            patch = xcat[(r0 + kh) * W:(r0 + kh + rh) * W, :]
            acc = acc + jnp.dot(patch, w_ref[kh],
                                preferred_element_type=jnp.float32)
        y = jnp.maximum(acc * s_ref[...] + b_ref[...], 0.0)   # BN (eval) + ReLU in f32
        y3 = y.reshape(rh, W, TC)
        o_ref[0, r0:r0 + rh, :, :] = y3.astype(o_ref.dtype)
        if p_ref is not None:                         # fused MaxPool2d(2, 2)
            yw = jnp.max(y3.reshape(rh, W // 2, 2, TC), axis=2)
            yp = jnp.max(yw.reshape(rh // 2, 2, W // 2, TC), axis=1)
            p_ref[0, r0 // 2:(r0 + rh) // 2, :, :] = yp.astype(p_ref.dtype)


def _conv_bn_relu_kernel(x_ref, w_ref, s_ref, b_ref, o_ref):
    _conv_body(x_ref, w_ref, s_ref, b_ref, o_ref, None)


def _conv_bn_relu_pool_kernel(x_ref, w_ref, s_ref, b_ref, o_ref, p_ref):
    _conv_body(x_ref, w_ref, s_ref, b_ref, o_ref, p_ref)


def conv_bn_relu(x, w_packed, scale, bias, *, fuse_pool=False,
                 cout_tile=_COUT_TILE):
    # x: (N, H, W, Cin) bf16, w_packed: (3, 3*Cin, Cout) bf16, scale/bias: (Cout,) f32
    N, H, W, Cin = x.shape
    Cout = w_packed.shape[-1]
    tc = min(cout_tile, Cout)
    nj = Cout // tc

    xp = jnp.pad(x, ((0, 0), (1, 1), (1, 1), (0, 0)))   # padding=1 (glue)

    in_specs = [
        pl.BlockSpec((1, H + 2, W + 2, Cin), lambda n, j: (n, 0, 0, 0)),
        pl.BlockSpec((3, 3 * Cin, tc), lambda n, j: (0, 0, j)),
        pl.BlockSpec((1, tc), lambda n, j: (0, j)),
        pl.BlockSpec((1, tc), lambda n, j: (0, j)),
    ]
    if fuse_pool:
        kernel = _conv_bn_relu_pool_kernel
        out_shape = (jax.ShapeDtypeStruct((N, H, W, Cout), jnp.bfloat16),
                     jax.ShapeDtypeStruct((N, H // 2, W // 2, Cout),
                                          jnp.bfloat16))
        out_specs = (pl.BlockSpec((1, H, W, tc), lambda n, j: (n, 0, 0, j)),
                     pl.BlockSpec((1, H // 2, W // 2, tc),
                                  lambda n, j: (n, 0, 0, j)))
    else:
        kernel = _conv_bn_relu_kernel
        out_shape = jax.ShapeDtypeStruct((N, H, W, Cout), jnp.bfloat16)
        out_specs = pl.BlockSpec((1, H, W, tc), lambda n, j: (n, 0, 0, j))

    return pl.pallas_call(
        kernel,
        out_shape=out_shape,
        grid=(N, nj),                               # (batch, Cout tiles), both parallel
        in_specs=in_specs,
        out_specs=out_specs,
        compiler_params=pltpu.CompilerParams(
            dimension_semantics=("parallel", "parallel"),
            vmem_limit_bytes=32 * 1024 * 1024),     # keep headroom on v7x (64 MiB VMEM)
    )(xp, w_packed, scale.reshape(1, Cout), bias.reshape(1, Cout))


# --------------------------------------------------------------------------
# Deterministic synthetic parameters (same shapes as vgg19_bn features[:40])
# --------------------------------------------------------------------------
def init_vgg19_bn_params(key):
    params = []
    cin = 3
    for i, v in enumerate(VGG19_CFG):
        if v == "M":
            continue
        pool_after = (i + 1 < len(VGG19_CFG) and VGG19_CFG[i + 1] == "M")
        k = jax.random.fold_in(key, i)
        kw_, kg, kb, km, kv = jax.random.split(k, 5)
        fan_in = cin * 9
        w = jax.random.normal(kw_, (3, 3, cin, v), jnp.float32) * (2.0 / fan_in) ** 0.5
        gamma = 1.0 + 0.1 * jax.random.normal(kg, (v,), jnp.float32)
        beta = 0.1 * jax.random.normal(kb, (v,), jnp.float32)
        run_mean = 0.1 * jax.random.normal(km, (v,), jnp.float32)
        run_var = jnp.abs(1.0 + 0.1 * jax.random.normal(kv, (v,), jnp.float32))
        scale = gamma / jnp.sqrt(run_var + BN_EPS)     # fold BN (eval mode)
        bias = beta - run_mean * scale
        # pack the 3 kw taps along the contraction dim: (3, 3*Cin, Cout), bf16
        w_packed = w.reshape(3, 3 * cin, v).astype(jnp.bfloat16)
        params.append((w_packed, scale, bias, pool_after))
        cin = v
    return params


# --------------------------------------------------------------------------
# Forward: mirrors VGG.forward -> (feats, sizes), feats captured before pools
# --------------------------------------------------------------------------
def vgg_forward(params, x_nchw):
    x = jnp.transpose(x_nchw, (0, 2, 3, 1)).astype(jnp.bfloat16)  # NCHW -> NHWC bf16
    feats, sizes = [], []
    for w_packed, scale, bias, pool_after in params:
        if pool_after:
            feat, x = conv_bn_relu(x, w_packed, scale, bias, fuse_pool=True)
            sizes.append((feat.shape[1], feat.shape[2]))           # (H, W) pre-pool
            feats.append(jnp.transpose(feat, (0, 3, 1, 2)).astype(jnp.float32))
        else:
            x = conv_bn_relu(x, w_packed, scale, bias)
    return feats, sizes


if __name__ == "__main__":
    key = jax.random.PRNGKey(0)
    pkey, xkey = jax.random.split(key)
    params = init_vgg19_bn_params(pkey)

    # PyTorch-style NCHW input, 3 channels as VGG expects, small spatial size.
    x = jax.random.normal(xkey, (2, 3, 16, 16), jnp.float32)

    feats, sizes = vgg_forward(params, x)
    feats = [jax.block_until_ready(f) for f in feats]

    expected_shapes = [(2, 64, 16, 16), (2, 128, 8, 8),
                       (2, 256, 4, 4), (2, 512, 2, 2)]
    assert [tuple(f.shape) for f in feats] == expected_shapes, \
        [tuple(f.shape) for f in feats]
    assert sizes == [(16, 16), (8, 8), (4, 4), (2, 2)], sizes
    assert all(bool(jnp.all(jnp.isfinite(f))) for f in feats)

    # Numerical sanity check of the first stage against an XLA conv reference
    # (loose tolerance: kernels use bf16 activations/weights, f32 accumulate).
    xr = jnp.transpose(x, (0, 2, 3, 1)).astype(jnp.bfloat16).astype(jnp.float32)
    for w_packed, scale, bias, _ in params[:2]:
        cin = w_packed.shape[1] // 3
        cout = w_packed.shape[2]
        w_f32 = w_packed.astype(jnp.float32).reshape(3, 3, cin, cout)
        xr = jax.lax.conv_general_dilated(
            xr, w_f32, (1, 1), "SAME",
            dimension_numbers=("NHWC", "HWIO", "NHWC"))
        xr = jnp.maximum(xr * scale + bias, 0.0)
    ref0 = jnp.transpose(xr, (0, 3, 1, 2))
    assert bool(jnp.allclose(ref0, feats[0], rtol=5e-2, atol=5e-2)), \
        float(jnp.max(jnp.abs(ref0 - feats[0])))

    print("KERNEL_OK")
</pallas_src>

<mosaic_0001>
module attributes {stable_mosaic.version = 11 : i64} {
  func.func @_conv_bn_relu_kernel(%arg0: i32, %arg1: i32, %arg2: memref<1x18x18x3xbf16, #tpu.memory_space<vmem>>, %arg3: memref<3x9x64xbf16, #tpu.memory_space<vmem>>, %arg4: memref<1x64xf32, #tpu.memory_space<vmem>>, %arg5: memref<1x64xf32, #tpu.memory_space<vmem>>, %arg6: memref<1x16x16x64xbf16, #tpu.memory_space<vmem>>) attributes {dimension_semantics = [#tpu.dimension_semantics<parallel>, #tpu.dimension_semantics<parallel>], iteration_bounds = array<i64: 2, 1>, scalar_prefetch = 0 : i64, scratch_operands = 0 : i64, tpu.core_type = #tpu.core_type<tc>, window_params = [{transform_indices = @transform_0, window_bounds = array<i64: 1, 18, 18, 3>}, {transform_indices = @transform_1, window_bounds = array<i64: 3, 9, 64>}, {transform_indices = @transform_2, window_bounds = array<i64: 1, 64>}, {transform_indices = @transform_3, window_bounds = array<i64: 1, 64>}, {transform_indices = @transform_4, window_bounds = array<i64: 1, 16, 16, 64>}]} {
    %c0 = arith.constant 0 : index
    %c0_0 = arith.constant 0 : index
    %c0_1 = arith.constant 0 : index
    %c0_2 = arith.constant 0 : index
    %0 = vector.load %arg2[%c0, %c0_0, %c0_1, %c0_2] : memref<1x18x18x3xbf16, #tpu.memory_space<vmem>>, vector<1x18x18x3xbf16>
    %1 = vector.shape_cast %0 : vector<1x18x18x3xbf16> to vector<18x18x3xbf16>
    %2 = vector.extract_strided_slice %1 {offsets = [0, 0, 0], sizes = [18, 16, 3], strides = [1, 1, 1]} : vector<18x18x3xbf16> to vector<18x16x3xbf16>
    %3 = vector.shape_cast %2 : vector<18x16x3xbf16> to vector<288x3xbf16>
    %4 = vector.extract_strided_slice %1 {offsets = [0, 1, 0], sizes = [18, 16, 3], strides = [1, 1, 1]} : vector<18x18x3xbf16> to vector<18x16x3xbf16>
    %5 = vector.shape_cast %4 : vector<18x16x3xbf16> to vector<288x3xbf16>
    %6 = vector.extract_strided_slice %1 {offsets = [0, 2, 0], sizes = [18, 16, 3], strides = [1, 1, 1]} : vector<18x18x3xbf16> to vector<18x16x3xbf16>
    %7 = vector.shape_cast %6 : vector<18x16x3xbf16> to vector<288x3xbf16>
    %8 = tpu.concatenate %3, %5, %7 in 1 : vector<288x3xbf16>, vector<288x3xbf16>, vector<288x3xbf16> -> vector<288x9xbf16>
    %cst = arith.constant 0.000000e+00 : f32
    %9 = vector.broadcast %cst : f32 to vector<256x64xf32>
    %10 = vector.extract_strided_slice %8 {offsets = [0, 0], sizes = [256, 9], strides = [1, 1]} : vector<288x9xbf16> to vector<256x9xbf16>
    %c0_3 = arith.constant 0 : index
    %c0_4 = arith.constant 0 : index
    %c0_5 = arith.constant 0 : index
    %11 = vector.load %arg3[%c0_3, %c0_4, %c0_5] : memref<3x9x64xbf16, #tpu.memory_space<vmem>>, vector<1x9x64xbf16>
    %12 = vector.shape_cast %11 : vector<1x9x64xbf16> to vector<9x64xbf16>
    %cst_6 = arith.constant dense<0.000000e+00> : vector<256x64xf32>
    %13 = tpu.matmul %10, %12, %cst_6 {dimension_numbers = #tpu.dot_dimension_numbers<[1], [0], [0], [1], [0, 0, 1, 1], [], []>} : vector<256x9xbf16>, vector<9x64xbf16>, vector<256x64xf32> -> vector<256x64xf32>
    %14 = arith.addf %9, %13 : vector<256x64xf32>
    %15 = vector.extract_strided_slice %8 {offsets = [16, 0], sizes = [256, 9], strides = [1, 1]} : vector<288x9xbf16> to vector<256x9xbf16>
    %c1 = arith.constant 1 : index
    %c0_7 = arith.constant 0 : index
    %c0_8 = arith.constant 0 : index
    %16 = vector.load %arg3[%c1, %c0_7, %c0_8] : memref<3x9x64xbf16, #tpu.memory_space<vmem>>, vector<1x9x64xbf16>
    %17 = vector.shape_cast %16 : vector<1x9x64xbf16> to vector<9x64xbf16>
    %cst_9 = arith.constant dense<0.000000e+00> : vector<256x64xf32>
    %18 = tpu.matmul %15, %17, %cst_9 {dimension_numbers = #tpu.dot_dimension_numbers<[1], [0], [0], [1], [0, 0, 1, 1], [], []>} : vector<256x9xbf16>, vector<9x64xbf16>, vector<256x64xf32> -> vector<256x64xf32>
    %19 = arith.addf %14, %18 : vector<256x64xf32>
    %20 = vector.extract_strided_slice %8 {offsets = [32, 0], sizes = [256, 9], strides = [1, 1]} : vector<288x9xbf16> to vector<256x9xbf16>
    %c2 = arith.constant 2 : index
    %c0_10 = arith.constant 0 : index
    %c0_11 = arith.constant 0 : index
    %21 = vector.load %arg3[%c2, %c0_10, %c0_11] : memref<3x9x64xbf16, #tpu.memory_space<vmem>>, vector<1x9x64xbf16>
    %22 = vector.shape_cast %21 : vector<1x9x64xbf16> to vector<9x64xbf16>
    %cst_12 = arith.constant dense<0.000000e+00> : vector<256x64xf32>
    %23 = tpu.matmul %20, %22, %cst_12 {dimension_numbers = #tpu.dot_dimension_numbers<[1], [0], [0], [1], [0, 0, 1, 1], [], []>} : vector<256x9xbf16>, vector<9x64xbf16>, vector<256x64xf32> -> vector<256x64xf32>
    %24 = arith.addf %19, %23 : vector<256x64xf32>
    %c0_13 = arith.constant 0 : index
    %c0_14 = arith.constant 0 : index
    %25 = vector.load %arg4[%c0_13, %c0_14] : memref<1x64xf32, #tpu.memory_space<vmem>>, vector<1x64xf32>
    %26 = vector.broadcast %25 : vector<1x64xf32> to vector<256x64xf32>
    %27 = arith.mulf %24, %26 : vector<256x64xf32>
    %c0_15 = arith.constant 0 : index
    %c0_16 = arith.constant 0 : index
    %28 = vector.load %arg5[%c0_15, %c0_16] : memref<1x64xf32, #tpu.memory_space<vmem>>, vector<1x64xf32>
    %29 = vector.broadcast %28 : vector<1x64xf32> to vector<256x64xf32>
    %30 = arith.addf %27, %29 : vector<256x64xf32>
    %cst_17 = arith.constant 0.000000e+00 : f32
    %31 = vector.broadcast %cst_17 : f32 to vector<256x64xf32>
    %32 = arith.maximumf %30, %31 : vector<256x64xf32>
    %33 = vector.shape_cast %32 : vector<256x64xf32> to vector<16x16x64xf32>
    %34 = arith.truncf %33 : vector<16x16x64xf32> to vector<16x16x64xbf16>
    %c0_18 = arith.constant 0 : index
    %c0_19 = arith.constant 0 : index
    %c0_20 = arith.constant 0 : index
    %c0_21 = arith.constant 0 : index
    %35 = vector.load %arg6[%c0_18, %c0_19, %c0_20, %c0_21] : memref<1x16x16x64xbf16, #tpu.memory_space<vmem>>, vector<1x16x16x64xbf16>
    %36 = vector.shape_cast %35 : vector<1x16x16x64xbf16> to vector<16x16x64xbf16>
    %37 = vector.shape_cast %34 : vector<16x16x64xbf16> to vector<1x16x16x64xbf16>
    tpu.vector_store %arg6[%c0_18, %c0_19, %c0_20, %c0_21], %37 {strides = array<i32>} : memref<1x16x16x64xbf16, #tpu.memory_space<vmem>>, vector<1x16x16x64xbf16>,
    return
  }
  func.func @transform_0(%arg0: i32, %arg1: i32) -> (i32, i32, i32, i32) {
    %c0_i32 = arith.constant 0 : i32
    %c0_i32_0 = arith.constant 0 : i32
    %c0_i32_1 = arith.constant 0 : i32
    %c0_i32_2 = arith.constant 0 : i32
    return %arg0, %c0_i32, %c0_i32_0, %c0_i32_1 : i32, i32, i32, i32
  }
  func.func @transform_1(%arg0: i32, %arg1: i32) -> (i32, i32, i32) {
    %c0_i32 = arith.constant 0 : i32
    %c0_i32_0 = arith.constant 0 : i32
    %c0_i32_1 = arith.constant 0 : i32
    return %c0_i32, %c0_i32_0, %arg1 : i32, i32, i32
  }
  func.func @transform_2(%arg0: i32, %arg1: i32) -> (i32, i32) {
    %c0_i32 = arith.constant 0 : i32
    %c0_i32_0 = arith.constant 0 : i32
    return %c0_i32, %arg1 : i32, i32
  }
  func.func @transform_3(%arg0: i32, %arg1: i32) -> (i32, i32) {
    %c0_i32 = arith.constant 0 : i32
    %c0_i32_0 = arith.constant 0 : i32
    return %c0_i32, %arg1 : i32, i32
  }
  func.func @transform_4(%arg0: i32, %arg1: i32) -> (i32, i32, i32, i32) {
    %c0_i32 = arith.constant 0 : i32
    %c0_i32_0 = arith.constant 0 : i32
    %c0_i32_1 = arith.constant 0 : i32
    return %arg0, %c0_i32, %c0_i32_0, %arg1 : i32, i32, i32, i32
  }
}

</mosaic_0001>

<bundles_post_ra>
// kernel: tpu_custom_call.1
= control target key start
LH: loop header
LB: loop body
LE: loop exit
PB: predicated region body
PF: predicated region fallthrough
CT: control target
= control target key end

     0   :  { %9 = vsyncpa [#allocation3], 0  ;;  %s3736_s0 = inlined_call_operand.vmem [shape: bf16[2,18,18,3], index: 0, kind: input, shape index: {}]   ;;  %s3737_s1 = inlined_call_operand.vmem [shape: bf16[3,9,64], index: 1, kind: input, shape index: {}]   ;;  %s3738_s2 = inlined_call_operand.vmem [shape: f32[1,64], index: 2, kind: input, shape index: {}]   ;;  %s3739_s3 = inlined_call_operand.vmem [shape: f32[1,64], index: 3, kind: input, shape index: {}]   ;;  %s3740_s4 = inlined_call_operand.hbm [shape: bf16[2,16,16,64], index: 4, kind: output, shape index: {}]  }
   0x1   :  { %11 = vsyncpa [#allocation3 + $0x1], 0  ;;  %s2866_s15 = smov 0   ;;  %s2868_s16 = smov 0  }
   0x2   :  { %s2870_s17 = smov 0   ;;  %s2872_s18 = smov 0  }
   0x3   :  { %s2874_s19 = smov 0   ;;  %s2876_s20 = smov 0  }
   0x4 LB: > { %s2239_s21 = sadd.s32 4294967295, %s2833_s20   ;;  %s2240_s22 = sadd.s32 4294967294, %s2833_s20   ;;  %s2833_s20 = sphi %s2876_s20, %s17_s20   ;;  %s2829_s19 = sphi %s2874_s19, %s3751_s19   ;;  %s2825_s18 = sphi %s2872_s18, %s3750_s18   ;;  %s2821_s17 = sphi %s2870_s17, %s3749_s17   ;;  %s2817_s16 = sphi %s2868_s16, %s3748_s16   ;;  %s2813_s15 = sphi %s2866_s15, %s3747_s15  }
   0x5   : > { %s29_s23 = sadd.s32 1, %s2829_s19  ;;  %s142_s24 = sadd.s32 1, %s2821_s17 }
   0x6   : > { %p31_p0 = scmp.ge.s32.totalorder %s29_s23, 2  ;;  %p152_p1 = scmp.ne.s32.totalorder %s2821_s17, %s2817_s16 }
   0x7   : > { %p153_p2 = scmp.eq.s32.totalorder %s2239_s21, 1  ;;  %p158_p3 = scmp.ne.s32.totalorder %s2817_s16, %s2813_s15 }
   0x8   : > { %s3753_s23 = smov (%p31_p0, %s29_s23), 0  ;;  %p159_p5 = scmp.eq.s32.totalorder %s2240_s22, 1 }
   0x9   : > { %p2906_p4 = por %p153_p2, %p152_p1  ;;  %s137_s26 = ssub.s32 %s2829_s19, %s3753_s23 }
   0xa   : > { %p2246_p6 = scmp.ge.s32.totalorder %s2833_s20, 1  ;;  %p140_p7 = scmp.eq.s32.totalorder %s137_s26, 0 }
   0xb   : > { %p2913_p8 = por %p159_p5, %p158_p3  ;;  %p204_p9 = scmp.lt.s32.totalorder %s2833_s20, 3 }
   0xc   : > { %s2919_s28 = scalar_select %p140_p7, %s2821_s17, %s142_s24  }
   0xd   : > { %p205_p10 = pnand %p2246_p6, %p204_p9 }
   0xe   : > { %p240_p11 = scmp.lt.s32.totalorder (!%p205_p10), %s2825_s18, 1  ;;  %vm799_vm0 = vcmask (!%p205_p10), 1042432   ;;  %vm800_vm1 = vcmask (!%p205_p10), 1046532   ;;  %vm310_vm3 = vsmask.f32 (!%p205_p10), 3328  ;;  %s2835_s8 = smov (!%p205_p10), 6  }
   0xf   : > { %208 = sbr.rel (%p205_p10) target bundleno = 525 (0x20d), region = 36  ;;  %vm2928_vm2 = vmor (!%p205_p10), %vm799_vm0, %vm800_vm1  ;;  %vm311_vm4 = vsmask.f32 (!%p205_p10), 7440  ;;  %s2836_s9 = smov (!%p205_p10), 3   ;;  %vm1297_vm6 = vcmask (!%p205_p10), 1043456   ;;  %vm1298_vm7 = vcmask (!%p205_p10), 1044480  }
  0x10   : > { %vm2958_vm5 = vmor (!%p205_p10), %vm310_vm3, %vm311_vm4  ;;  %vm1162_vm8 = vcmask (!%p205_p10), 23552   ;;  %vm1217_vm9 = vcmask (!%p205_p10), 48128   ;;  %vm1264_vm10 = vcmask (!%p205_p10), 72704   ;;  %s237_s26 = sand.u32 (!%p205_p10), 1, %s2817_s16   ;;  %vm2080_vm11 = vcmask (!%p205_p10), 519168   ;;  %s2838_s13 = smov (!%p205_p10), [#allocation2]  }
  0x11   : > { %s2247_s5 = sshll.u32 (!%p205_p10), %s237_s26, 7  ;;  %s2759_s14 = sshll.u32 (!%p205_p10), %s2838_s13, 4  ;;  %s2760_s14 = int_to_ptr.vmem [resolvable:$false] %s2759_s14 }
  0x12   : > { %s3534_s6 = scalar_lea.vmem (!%p205_p10), [#allocation2], %s2247_s5  ;;  %s2761_s21 = scalar_lea.vmem (!%p205_p10), %s2760_s14, 4096 }
  0x16   : > { %s241_s29 = scalar_select %p240_p11, %s2825_s18, 1 }
  0x18   : > { %s2667_s30 = smul.u32 216, %s241_s29 }
  0x1a   : > { %s2926_s7 = scalar_lea.vmem %s3736_s0, %s2667_s30 }
  0x1b   : > { %v256_v1 = vld [vmem:[%s2926_s7] sm:$0xf]  ;;  %v257_v2 = vld [vmem:[%s2926_s7 + $0x4] sm:$0xf]  ;;  %v258_v3 = vld [vmem:[%s2926_s7 + $0x8] sm:$0x1] }
  0x1c   : > { %v2249_v4 = vrot.slane %v256_v1, 9  ;;  %v804_v5 = vrot.slane %v257_v2, 5  ;;  %v807_v6 = vrot.slane %v258_v3, 5  ;;  %v314_v7 = vshrl.u32 %v256_v1, 16  ;;  %v2936_v8 = vld [vmem:[%s2926_s7 + $0x18] sm:$0xf] }
  0x1d   : > { %v317_v9 = vshll.u32 %v256_v1, 16  ;;  %v323_v10 = vshll.u32 %v257_v2, 16  ;;  %v327_v11 = vshrl.u32 %v257_v2, 16  ;;  %v333_v12 = vshll.u32 %v258_v3, 16  ;;  %v2939_v13 = vld [vmem:[%s2926_s7 + $0x1c] sm:$0xf] }
  0x1e   : > { %v805_v14 = vsel %vm2928_vm2, %v2249_v4, %v804_v5  ;;  %v806_v15 = vrot.slane %v804_v5, 4  ;;  %v316_v16 = vrot.slane %v314_v7, 4  ;;  %v2944_v17 = vld [vmem:[%s2926_s7 + $0x20] sm:$0x1]  ;;  %v362_v18 = vshrl.u32 %v2936_v8, 16 }
  0x1f   : > { %v319_v19 = vrot.slane %v317_v9, 5  ;;  %v325_v20 = vrot.slane %v323_v10, 5  ;;  %v329_v21 = vrot.slane %v327_v11, 4  ;;  %v335_v22 = vrot.slane %v333_v12, 5  ;;  %v2948_v23 = vld [vmem:[%s2926_s7 + $0xc] sm:$0xf] }
  0x20   : > { %v808_v24 = vsel %vm2928_vm2, %v806_v15, %v807_v6  ;;  %v364_v25 = vrot.slane %v362_v18, 4  ;;  %v365_v26 = vshll.u32 %v2936_v8, 16  ;;  %v371_v27 = vshll.u32 %v2939_v13, 16  ;;  %v260_v32 = vld [vmem:[%s2926_s7 + $0x10] sm:$0xf] }
  0x21   : > { %v2303_v28 = vcombine.low %v805_v14, %v808_v24  ;;  %v320_v29 = vor.u32 %v319_v19, %v316_v16  ;;  %v330_v30 = vor.u32 %v329_v21, %v325_v20  ;;  %v375_v31 = vshrl.u32 %v2939_v13, 16  ;;  %v261_v44 = vld [vmem:[%s2926_s7 + $0x14] sm:$0x1]  ;;  %v2978_v63 = vld [vmem:[%s2926_s7 + $0x30] sm:$0xf] }
  0x22   : > { %v367_v34 = vrot.slane %v365_v26, 5  ;;  %v373_v35 = vrot.slane %v371_v27, 5  ;;  %v381_v36 = vshll.u32 %v2944_v17, 16  ;;  %v338_v37 = vshrl.u32 %v2948_v23, 16  ;;  %v2984_v5 = vld [vmem:[%s2926_s7 + $0x34] sm:$0xf] }
  0x23   : > { %1126 = vrot.lane.b32.xlu1 %v2303_v28, %s2835_s8  ;;  %v321_v38 = vrot.slane %v320_v29, 4  ;;  %v331_v39 = vrot.slane %v330_v30, 4  ;;  %v377_v40 = vrot.slane %v375_v31, 4  ;;  %v341_v41 = vshll.u32 %v2948_v23, 16  ;;  %v2998_v19 = vld [vmem:[%s2926_s7 + $0x24] sm:$0xf] }
  0x24   : > { %v368_v42 = vor.u32 %v367_v34, %v364_v25  ;;  %v383_v43 = vrot.slane %v381_v36, 5  ;;  %v340_v45 = vrot.slane %v338_v37, 4  ;;  %v347_v46 = vshll.u32 %v260_v32, 16  ;;  %v3006_v28 = vld [vmem:[%s2926_s7 + $0x28] sm:$0xf] }
  0x25   : > { %v326_v47 = vsel %vm2958_vm5, %v321_v38, %v325_v20  ;;  %v336_v48 = vsel %vm2958_vm5, %v331_v39, %v335_v22  ;;  %v378_v49 = vor.u32 %v377_v40, %v373_v35  ;;  %v343_v50 = vrot.slane %v341_v41, 5 }
  0x26   : > { %v2285_v51 = vcombine.low %v326_v47, %v336_v48  ;;  %v369_v52 = vrot.slane %v368_v42, 4  ;;  %v349_v53 = vrot.slane %v347_v46, 5  ;;  %v351_v54 = vshrl.u32 %v260_v32, 16 }
  0x27   : > { %v379_v55 = vrot.slane %v378_v49, 4  ;;  %v344_v56 = vor.u32 %v343_v50, %v340_v45  ;;  %v357_v57 = vshll.u32 %v261_v44, 16  ;;  %v2251_v58 = vrot.slane %v2936_v8, 9 }
  0x28   : > { %1036 = vrot.lane.b32.xlu0 %v2285_v51, %s2836_s9  ;;  %v374_v59 = vsel %vm2958_vm5, %v369_v52, %v373_v35  ;;  %v353_v60 = vrot.slane %v351_v54, 4  ;;  %v818_v61 = vrot.slane %v2939_v13, 5  ;;  %v821_v62 = vrot.slane %v2944_v17, 5  ;;  %v270_v13 = vld [vmem:[%s2926_s7 + $0x38] sm:$0x1] }
  0x29   : > { %v384_v1 = vsel %vm2958_vm5, %v379_v55, %v383_v43  ;;  %v345_v2 = vrot.slane %v344_v56, 4  ;;  %v359_v3 = vrot.slane %v357_v57, 5  ;;  %v2250_v4 = vrot.slane %v2948_v23, 9 }
  0x2a   : > { %v2287_v6 = vcombine.low %v374_v59, %v384_v1  ;;  %v354_v7 = vor.u32 %v353_v60, %v349_v53  ;;  %v819_v8 = vsel %vm2928_vm2, %v2251_v58, %v818_v61  ;;  %v820_v9 = vrot.slane %v818_v61, 4  ;;  %v3025_v59 = vld [vmem:[%s2926_s7 + $0x48] sm:$0xf] }
  0x2b   : > { %v350_v10 = vsel %vm2958_vm5, %v345_v2, %v349_v53  ;;  %v811_v11 = vrot.slane %v260_v32, 5  ;;  %v814_v12 = vrot.slane %v261_v44, 5  ;;  %v410_v14 = vshrl.u32 %v2978_v63, 16  ;;  %v267_v32 = vld [vmem:[%s2926_s7 + $0x2c] sm:$0x1] }
  0x2c   : > { %1040 = vrot.lane.b32.xlu1 %v2287_v6, %s2836_s9  ;;  %v355_v15 = vrot.slane %v354_v7, 4  ;;  %v822_v16 = vsel %vm2928_vm2, %v820_v9, %v821_v62  ;;  %v413_v17 = vshll.u32 %v2978_v63, 16  ;;  %v419_v18 = vshll.u32 %v2984_v5, 16  ;;  %v3032_v2 = vld [vmem:[%s2926_s7 + $0x4c] sm:$0xf] }
  0x2d   : > { %v2305_v20 = vcombine.low %v819_v8, %v822_v16  ;;  %v812_v21 = vsel %vm2928_vm2, %v2250_v4, %v811_v11  ;;  %v813_v22 = vrot.slane %v811_v11, 4  ;;  %v412_v23 = vrot.slane %v410_v14, 4  ;;  %v276_v8 = vld [vmem:[%s2926_s7 + $0x50] sm:$0x1] }
  0x2e   : > { %v360_v24 = vsel %vm2958_vm5, %v355_v15, %v359_v3  ;;  %v415_v25 = vrot.slane %v413_v17, 5  ;;  %v421_v26 = vrot.slane %v419_v18, 5  ;;  %v423_v27 = vshrl.u32 %v2984_v5, 16  ;;  %v3048_v17 = vld [vmem:[%s2926_s7 + $0x3c] sm:$0xf] }
  0x2f   : > { %v2286_v29 = vcombine.low %v350_v10, %v360_v24  ;;  %v815_v30 = vsel %vm2928_vm2, %v813_v22, %v814_v12  ;;  %v429_v31 = vshll.u32 %v270_v13, 16  ;;  %v386_v34 = vshrl.u32 %v2998_v19, 16  ;;  %v273_v24 = vld [vmem:[%s2926_s7 + $0x44] sm:$0x1] }
  0x30   : > { %1130 = vrot.lane.b32.xlu1 %v2305_v20, %s2835_s8  ;;  %v2304_v35 = vcombine.low %v812_v21, %v815_v30  ;;  %v416_v36 = vor.u32 %v415_v25, %v412_v23  ;;  %v425_v37 = vrot.slane %v423_v27, 4  ;;  %v389_v38 = vshll.u32 %v2998_v19, 16  ;;  %v3054_v23 = vld [vmem:[%s2926_s7 + $0x40] sm:$0xf] }
  0x31   : > { %1038 = vrot.lane.b32.xlu0 %v2286_v29, %s2836_s9  ;;  %v431_v39 = vrot.slane %v429_v31, 5  ;;  %v388_v40 = vrot.slane %v386_v34, 4  ;;  %v395_v41 = vshll.u32 %v3006_v28, 16  ;;  %v399_v42 = vshrl.u32 %v3006_v28, 16 }
  0x32   : > { %v417_v43 = vrot.slane %v416_v36, 4  ;;  %v426_v44 = vor.u32 %v425_v37, %v421_v26  ;;  %v391_v45 = vrot.slane %v389_v38, 5  ;;  %v405_v46 = vshll.u32 %v267_v32, 16 }
  0x33   : > { %v397_v47 = vrot.slane %v395_v41, 5  ;;  %v401_v48 = vrot.slane %v399_v42, 4  ;;  %v2253_v49 = vrot.slane %v2978_v63, 9  ;;  %v832_v50 = vrot.slane %v2984_v5, 5 }
  0x34   : > { %v422_v51 = vsel %vm2958_vm5, %v417_v43, %v421_v26  ;;  %v427_v52 = vrot.slane %v426_v44, 4  ;;  %v392_v53 = vor.u32 %v391_v45, %v388_v40  ;;  %v407_v54 = vrot.slane %v405_v46, 5 }
  0x35   : > { %1128 = vrot.lane.b32.xlu0 %v2304_v35, %s2835_s8  ;;  %v402_v55 = vor.u32 %v401_v48, %v397_v47  ;;  %v833_v56 = vsel %vm2928_vm2, %v2253_v49, %v832_v50  ;;  %v834_v57 = vrot.slane %v832_v50, 4  ;;  %v835_v58 = vrot.slane %v270_v13, 5 }
  0x36   : > { %v432_v60 = vsel %vm2958_vm5, %v427_v52, %v431_v39  ;;  %v393_v61 = vrot.slane %v392_v53, 4  ;;  %v2252_v62 = vrot.slane %v2998_v19, 9  ;;  %v825_v1 = vrot.slane %v3006_v28, 5 }
  0x37   : > { %v2289_v3 = vcombine.low %v422_v51, %v432_v60  ;;  %v403_v4 = vrot.slane %v402_v55, 4  ;;  %v836_v6 = vsel %vm2928_vm2, %v834_v57, %v835_v58  ;;  %v828_v7 = vrot.slane %v267_v32, 5  ;;  %v3071_v55 = vld [vmem:[%s2926_s7 + $0x60] sm:$0xf] }
  0x38   : > { %v398_v9 = vsel %vm2958_vm5, %v393_v61, %v397_v47  ;;  %v2307_v10 = vcombine.low %v833_v56, %v836_v6  ;;  %v826_v11 = vsel %vm2928_vm2, %v2252_v62, %v825_v1  ;;  %v827_v12 = vrot.slane %v825_v1, 4  ;;  %v3078_v61 = vld [vmem:[%s2926_s7 + $0x64] sm:$0xf] }
  0x39   : > { %1044 = vrot.lane.b32.xlu1 %v2289_v3, %s2836_s9  ;;  %v408_v13 = vsel %vm2958_vm5, %v403_v4, %v407_v54  ;;  %v458_v14 = vshrl.u32 %v3025_v59, 16  ;;  %v461_v15 = vshll.u32 %v3025_v59, 16  ;;  %v467_v16 = vshll.u32 %v3032_v2, 16 }
  0x3a   : > { %v2288_v18 = vcombine.low %v398_v9, %v408_v13  ;;  %v829_v20 = vsel %vm2928_vm2, %v827_v12, %v828_v7  ;;  %v471_v21 = vshrl.u32 %v3032_v2, 16  ;;  %v477_v22 = vshll.u32 %v276_v8, 16  ;;  %v282_v9 = vld [vmem:[%s2926_s7 + $0x68] sm:$0x1] }
  0x3b   : > { %v2306_v25 = vcombine.low %v826_v11, %v829_v20  ;;  %v460_v26 = vrot.slane %v458_v14, 4  ;;  %v463_v27 = vrot.slane %v461_v15, 5  ;;  %v469_v29 = vrot.slane %v467_v16, 5  ;;  %v3094_v15 = vld [vmem:[%s2926_s7 + $0x54] sm:$0xf] }
  0x3c   : > { %1042 = vrot.lane.b32.xlu0 %v2288_v18, %s2836_s9  ;;  %v473_v30 = vrot.slane %v471_v21, 4  ;;  %v479_v31 = vrot.slane %v477_v22, 5  ;;  %v434_v32 = vshrl.u32 %v3048_v17, 16  ;;  %v437_v34 = vshll.u32 %v3048_v17, 16  ;;  %v3097_v16 = vld [vmem:[%s2926_s7 + $0x58] sm:$0xf] }
  0x3d   : > { %1134 = vrot.lane.b32.xlu1 %v2307_v10, %s2835_s8  ;;  %v464_v35 = vor.u32 %v463_v27, %v460_v26  ;;  %v443_v36 = vshll.u32 %v3054_v23, 16  ;;  %v447_v37 = vshrl.u32 %v3054_v23, 16  ;;  %v453_v38 = vshll.u32 %v273_v24, 16 }
  0x3e   : > { %v474_v39 = vor.u32 %v473_v30, %v469_v29  ;;  %v436_v40 = vrot.slane %v434_v32, 4  ;;  %v439_v41 = vrot.slane %v437_v34, 5  ;;  %v2255_v42 = vrot.slane %v3025_v59, 9 }
  0x3f   : > { %v465_v43 = vrot.slane %v464_v35, 4  ;;  %v445_v44 = vrot.slane %v443_v36, 5  ;;  %v449_v45 = vrot.slane %v447_v37, 4  ;;  %v455_v46 = vrot.slane %v453_v38, 5 }
  0x40   : > { %1132 = vrot.lane.b32.xlu0 %v2306_v25, %s2835_s8  ;;  %v475_v47 = vrot.slane %v474_v39, 4  ;;  %v440_v48 = vor.u32 %v439_v41, %v436_v40  ;;  %v846_v49 = vrot.slane %v3032_v2, 5  ;;  %v849_v50 = vrot.slane %v276_v8, 5 }
  0x41   : > { %v470_v51 = vsel %vm2958_vm5, %v465_v43, %v469_v29  ;;  %v450_v52 = vor.u32 %v449_v45, %v445_v44  ;;  %v2254_v53 = vrot.slane %v3048_v17, 9  ;;  %v839_v54 = vrot.slane %v3054_v23, 5 }
  0x42   : > { %v480_v56 = vsel %vm2958_vm5, %v475_v47, %v479_v31  ;;  %v441_v57 = vrot.slane %v440_v48, 4  ;;  %v847_v58 = vsel %vm2928_vm2, %v2255_v42, %v846_v49  ;;  %v848_v60 = vrot.slane %v846_v49, 4 }
  0x43   : > { %v2291_v62 = vcombine.low %v470_v51, %v480_v56  ;;  %v451_v1 = vrot.slane %v450_v52, 4  ;;  %v840_v3 = vsel %vm2928_vm2, %v2254_v53, %v839_v54  ;;  %v841_v4 = vrot.slane %v839_v54, 4  ;;  %v3117_v56 = vld [vmem:[%s2926_s7 + $0x78] sm:$0xf] }
  0x44   : > { %v446_v6 = vsel %vm2958_vm5, %v441_v57, %v445_v44  ;;  %v850_v7 = vsel %vm2928_vm2, %v848_v60, %v849_v50  ;;  %v842_v8 = vrot.slane %v273_v24, 5  ;;  %v506_v10 = vshrl.u32 %v3071_v55, 16  ;;  %v279_v24 = vld [vmem:[%s2926_s7 + $0x5c] sm:$0x1] }
  0x45   : > { %1048 = vrot.lane.b32.xlu1 %v2291_v62, %s2836_s9  ;;  %v456_v11 = vsel %vm2958_vm5, %v451_v1, %v455_v46  ;;  %v2309_v12 = vcombine.low %v847_v58, %v850_v7  ;;  %v509_v13 = vshll.u32 %v3071_v55, 16  ;;  %v515_v14 = vshll.u32 %v3078_v61, 16  ;;  %v3124_v1 = vld [vmem:[%s2926_s7 + $0x7c] sm:$0xf] }
  0x46   : > { %v2290_v18 = vcombine.low %v446_v6, %v456_v11  ;;  %v843_v20 = vsel %vm2928_vm2, %v841_v4, %v842_v8  ;;  %v508_v21 = vrot.slane %v506_v10, 4  ;;  %v519_v22 = vshrl.u32 %v3078_v61, 16  ;;  %v288_v11 = vld [vmem:[%s2926_s7 + $0x80] sm:$0x1] }
  0x47   : > { %v2308_v25 = vcombine.low %v840_v3, %v843_v20  ;;  %v511_v26 = vrot.slane %v509_v13, 5  ;;  %v517_v27 = vrot.slane %v515_v14, 5  ;;  %v525_v29 = vshll.u32 %v282_v9, 16 }
  0x48   : > { %1046 = vrot.lane.b32.xlu0 %v2290_v18, %s2836_s9  ;;  %v521_v30 = vrot.slane %v519_v22, 4  ;;  %v482_v31 = vshrl.u32 %v3094_v15, 16  ;;  %v485_v32 = vshll.u32 %v3094_v15, 16  ;;  %v491_v34 = vshll.u32 %v3097_v16, 16  ;;  %v3143_v22 = vld [vmem:[%s2926_s7 + $0x70] sm:$0xf] }
  0x49   : > { %1138 = vrot.lane.b32.xlu1 %v2309_v12, %s2835_s8  ;;  %v512_v35 = vor.u32 %v511_v26, %v508_v21  ;;  %v527_v36 = vrot.slane %v525_v29, 5  ;;  %v495_v37 = vshrl.u32 %v3097_v16, 16  ;;  %v501_v38 = vshll.u32 %v279_v24, 16  ;;  %v3140_v21 = vld [vmem:[%s2926_s7 + $0x6c] sm:$0xf] }
  0x4a   : > { %v522_v39 = vor.u32 %v521_v30, %v517_v27  ;;  %v484_v40 = vrot.slane %v482_v31, 4  ;;  %v487_v41 = vrot.slane %v485_v32, 5  ;;  %v493_v42 = vrot.slane %v491_v34, 5  ;;  %v285_v29 = vld [vmem:[%s2926_s7 + $0x74] sm:$0x1] }
  0x4b   : > { %v513_v43 = vrot.slane %v512_v35, 4  ;;  %v497_v44 = vrot.slane %v495_v37, 4  ;;  %v503_v45 = vrot.slane %v501_v38, 5  ;;  %v2257_v46 = vrot.slane %v3071_v55, 9 }
  0x4c   : > { %1136 = vrot.lane.b32.xlu0 %v2308_v25, %s2835_s8  ;;  %v523_v47 = vrot.slane %v522_v39, 4  ;;  %v488_v48 = vor.u32 %v487_v41, %v484_v40  ;;  %v860_v49 = vrot.slane %v3078_v61, 5  ;;  %v863_v50 = vrot.slane %v282_v9, 5 }
  0x4d   : > { %v518_v51 = vsel %vm2958_vm5, %v513_v43, %v517_v27  ;;  %v498_v52 = vor.u32 %v497_v44, %v493_v42  ;;  %v2256_v53 = vrot.slane %v3094_v15, 9  ;;  %v853_v54 = vrot.slane %v3097_v16, 5 }
  0x4e   : > { %v528_v57 = vsel %vm2958_vm5, %v523_v47, %v527_v36  ;;  %v489_v58 = vrot.slane %v488_v48, 4  ;;  %v861_v60 = vsel %vm2928_vm2, %v2257_v46, %v860_v49  ;;  %v862_v62 = vrot.slane %v860_v49, 4 }
  0x4f   : > { %v2293_v3 = vcombine.low %v518_v51, %v528_v57  ;;  %v499_v4 = vrot.slane %v498_v52, 4  ;;  %v854_v6 = vsel %vm2928_vm2, %v2256_v53, %v853_v54  ;;  %v855_v7 = vrot.slane %v853_v54, 4 }
  0x50   : > { %v494_v8 = vsel %vm2958_vm5, %v489_v58, %v493_v42  ;;  %v864_v9 = vsel %vm2928_vm2, %v862_v62, %v863_v50  ;;  %v856_v10 = vrot.slane %v279_v24, 5  ;;  %v554_v12 = vshrl.u32 %v3117_v56, 16 }
  0x51   : > { %1052 = vrot.lane.b32.xlu1 %v2293_v3, %s2836_s9  ;;  %v504_v13 = vsel %vm2958_vm5, %v499_v4, %v503_v45  ;;  %v2311_v14 = vcombine.low %v861_v60, %v864_v9  ;;  %v557_v18 = vshll.u32 %v3117_v56, 16  ;;  %v563_v20 = vshll.u32 %v3124_v1, 16  ;;  %v3163_v3 = vld [vmem:[%s2926_s7 + $0x90] sm:$0xf]  ;;  %v3170_v9 = vld [vmem:[%s2926_s7 + $0x94] sm:$0xf] }
  0x52   : > { %v2292_v25 = vcombine.low %v494_v8, %v504_v13  ;;  %v857_v24 = vsel %vm2928_vm2, %v855_v7, %v856_v10  ;;  %v556_v26 = vrot.slane %v554_v12, 4  ;;  %v567_v27 = vshrl.u32 %v3124_v1, 16 }
  0x53   : > { %v2310_v30 = vcombine.low %v854_v6, %v857_v24  ;;  %v559_v31 = vrot.slane %v557_v18, 5  ;;  %v565_v32 = vrot.slane %v563_v20, 5  ;;  %v573_v34 = vshll.u32 %v288_v11, 16 }
  0x54   : > { %1050 = vrot.lane.b32.xlu0 %v2292_v25, %s2836_s9  ;;  %v569_v35 = vrot.slane %v567_v27, 4  ;;  %v530_v36 = vshrl.u32 %v3140_v21, 16  ;;  %v533_v37 = vshll.u32 %v3140_v21, 16  ;;  %v539_v38 = vshll.u32 %v3143_v22, 16  ;;  %v294_v25 = vld [vmem:[%s2926_s7 + $0x98] sm:$0x1] }
  0x55   : > { %1142 = vrot.lane.b32.xlu1 %v2311_v14, %s2835_s8  ;;  %v560_v39 = vor.u32 %v559_v31, %v556_v26  ;;  %v575_v40 = vrot.slane %v573_v34, 5  ;;  %v543_v41 = vshrl.u32 %v3143_v22, 16  ;;  %v549_v42 = vshll.u32 %v285_v29, 16  ;;  %v3189_v34 = vld [vmem:[%s2926_s7 + $0x88] sm:$0xf] }
  0x56   : > { %v570_v43 = vor.u32 %v569_v35, %v565_v32  ;;  %v532_v44 = vrot.slane %v530_v36, 4  ;;  %v535_v45 = vrot.slane %v533_v37, 5  ;;  %v541_v46 = vrot.slane %v539_v38, 5  ;;  %v291_v38 = vld [vmem:[%s2926_s7 + $0x8c] sm:$0x1] }
  0x57   : > { %v561_v47 = vrot.slane %v560_v39, 4  ;;  %v545_v48 = vrot.slane %v543_v41, 4  ;;  %v551_v49 = vrot.slane %v549_v42, 5  ;;  %v2259_v50 = vrot.slane %v3117_v56, 9 }
  0x58   : > { %1140 = vrot.lane.b32.xlu0 %v2310_v30, %s2835_s8  ;;  %v571_v51 = vrot.slane %v570_v43, 4  ;;  %v536_v52 = vor.u32 %v535_v45, %v532_v44  ;;  %v874_v53 = vrot.slane %v3124_v1, 5  ;;  %v877_v54 = vrot.slane %v288_v11, 5 }
  0x59   : > { %v566_v57 = vsel %vm2958_vm5, %v561_v47, %v565_v32  ;;  %v546_v58 = vor.u32 %v545_v48, %v541_v46  ;;  %v2258_v60 = vrot.slane %v3140_v21, 9  ;;  %v867_v62 = vrot.slane %v3143_v22, 5  ;;  %v3186_v32 = vld [vmem:[%s2926_s7 + $0x84] sm:$0xf] }
  0x5a   : > { %v576_v4 = vsel %vm2958_vm5, %v571_v51, %v575_v40  ;;  %v537_v6 = vrot.slane %v536_v52, 4  ;;  %v875_v7 = vsel %vm2928_vm2, %v2259_v50, %v874_v53  ;;  %v876_v8 = vrot.slane %v874_v53, 4 }
  0x5b   : > { %v2295_v10 = vcombine.low %v566_v57, %v576_v4  ;;  %v547_v11 = vrot.slane %v546_v58, 4  ;;  %v868_v12 = vsel %vm2928_vm2, %v2258_v60, %v867_v62  ;;  %v869_v13 = vrot.slane %v867_v62, 4 }
  0x5c   : > { %v542_v14 = vsel %vm2958_vm5, %v537_v6, %v541_v46  ;;  %v878_v18 = vsel %vm2928_vm2, %v876_v8, %v877_v54  ;;  %v870_v20 = vrot.slane %v285_v29, 5  ;;  %v602_v24 = vshrl.u32 %v3163_v3, 16 }
  0x5d   : > { %1056 = vrot.lane.b32.xlu1 %v2295_v10, %s2836_s9  ;;  %v552_v26 = vsel %vm2958_vm5, %v547_v11, %v551_v49  ;;  %v2313_v27 = vcombine.low %v875_v7, %v878_v18  ;;  %v605_v30 = vshll.u32 %v3163_v3, 16  ;;  %v611_v31 = vshll.u32 %v3170_v9, 16 }
  0x5e   : > { %v2294_v35 = vcombine.low %v542_v14, %v552_v26  ;;  %v871_v29 = vsel %vm2928_vm2, %v869_v13, %v870_v20  ;;  %v604_v36 = vrot.slane %v602_v24, 4  ;;  %v615_v37 = vshrl.u32 %v3170_v9, 16  ;;  %v3209_v14 = vld [vmem:[%s2926_s7 + $0xa8] sm:$0xf] }
  0x5f   : > { %v2312_v39 = vcombine.low %v868_v12, %v871_v29  ;;  %v607_v40 = vrot.slane %v605_v30, 5  ;;  %v613_v41 = vrot.slane %v611_v31, 5  ;;  %v621_v42 = vshll.u32 %v294_v25, 16 }
  0x60   : > { %1054 = vrot.lane.b32.xlu0 %v2294_v35, %s2836_s9  ;;  %v617_v43 = vrot.slane %v615_v37, 4  ;;  %v578_v44 = vshrl.u32 %v3186_v32, 16  ;;  %v581_v45 = vshll.u32 %v3186_v32, 16  ;;  %v587_v46 = vshll.u32 %v3189_v34, 16 }
  0x61   : > { %1146 = vrot.lane.b32.xlu1 %v2313_v27, %s2835_s8  ;;  %v608_v47 = vor.u32 %v607_v40, %v604_v36  ;;  %v623_v48 = vrot.slane %v621_v42, 5  ;;  %v591_v49 = vshrl.u32 %v3189_v34, 16  ;;  %v597_v50 = vshll.u32 %v291_v38, 16 }
  0x62   : > { %v618_v51 = vor.u32 %v617_v43, %v613_v41  ;;  %v580_v52 = vrot.slane %v578_v44, 4  ;;  %v583_v53 = vrot.slane %v581_v45, 5  ;;  %v589_v54 = vrot.slane %v587_v46, 5  ;;  %v3232_v45 = vld [vmem:[%s2926_s7 + $0x9c] sm:$0xf] }
  0x63   : > { %v609_v57 = vrot.slane %v608_v47, 4  ;;  %v593_v58 = vrot.slane %v591_v49, 4  ;;  %v599_v60 = vrot.slane %v597_v50, 5  ;;  %v2261_v62 = vrot.slane %v3163_v3, 9  ;;  %v3235_v46 = vld [vmem:[%s2926_s7 + $0xa0] sm:$0xf] }
  0x64   : > { %1144 = vrot.lane.b32.xlu0 %v2312_v39, %s2835_s8  ;;  %v619_v4 = vrot.slane %v618_v51, 4  ;;  %v584_v6 = vor.u32 %v583_v53, %v580_v52  ;;  %v888_v7 = vrot.slane %v3170_v9, 5  ;;  %v891_v8 = vrot.slane %v294_v25, 5  ;;  %v3216_v25 = vld [vmem:[%s2926_s7 + $0xac] sm:$0xf] }
  0x65   : > { %v614_v10 = vsel %vm2958_vm5, %v609_v57, %v613_v41  ;;  %v594_v11 = vor.u32 %v593_v58, %v589_v54  ;;  %v2260_v12 = vrot.slane %v3186_v32, 9  ;;  %v881_v13 = vrot.slane %v3189_v34, 5  ;;  %v300_v39 = vld [vmem:[%s2926_s7 + $0xb0] sm:$0x1]  ;;  %v297_v50 = vld [vmem:[%s2926_s7 + $0xa4] sm:$0x1] }
  0x66   : > { %v624_v18 = vsel %vm2958_vm5, %v619_v4, %v623_v48  ;;  %v585_v20 = vrot.slane %v584_v6, 4  ;;  %v889_v24 = vsel %vm2928_vm2, %v2261_v62, %v888_v7  ;;  %v890_v26 = vrot.slane %v888_v7, 4 }
  0x67   : > { %v2297_v27 = vcombine.low %v614_v10, %v624_v18  ;;  %v595_v30 = vrot.slane %v594_v11, 4  ;;  %v882_v31 = vsel %vm2928_vm2, %v2260_v12, %v881_v13  ;;  %v883_v35 = vrot.slane %v881_v13, 4 }
  0x68   : > { %v590_v29 = vsel %vm2958_vm5, %v585_v20, %v589_v54  ;;  %v892_v36 = vsel %vm2928_vm2, %v890_v26, %v891_v8  ;;  %v884_v37 = vrot.slane %v291_v38, 5  ;;  %v650_v40 = vshrl.u32 %v3209_v14, 16 }
  0x69   : > { %1060 = vrot.lane.b32.xlu1 %v2297_v27, %s2836_s9  ;;  %v600_v41 = vsel %vm2958_vm5, %v595_v30, %v599_v60  ;;  %v2315_v42 = vcombine.low %v889_v24, %v892_v36  ;;  %v653_v43 = vshll.u32 %v3209_v14, 16  ;;  %v659_v44 = vshll.u32 %v3216_v25, 16 }
  0x6a   : > { %v2296_v47 = vcombine.low %v590_v29, %v600_v41  ;;  %v885_v38 = vsel %vm2928_vm2, %v883_v35, %v884_v37  ;;  %v652_v48 = vrot.slane %v650_v40, 4  ;;  %v663_v49 = vshrl.u32 %v3216_v25, 16  ;;  %v3255_v41 = vld [vmem:[%s2926_s7 + $0xc0] sm:$0xf] }
  0x6b   : > { %v2314_v51 = vcombine.low %v882_v31, %v885_v38  ;;  %v655_v52 = vrot.slane %v653_v43, 5  ;;  %v661_v53 = vrot.slane %v659_v44, 5  ;;  %v669_v54 = vshll.u32 %v300_v39, 16 }
  0x6c   : > { %1058 = vrot.lane.b32.xlu0 %v2296_v47, %s2836_s9  ;;  %v665_v57 = vrot.slane %v663_v49, 4  ;;  %v626_v58 = vshrl.u32 %v3232_v45, 16  ;;  %v629_v60 = vshll.u32 %v3232_v45, 16  ;;  %v635_v62 = vshll.u32 %v3235_v46, 16 }
  0x6d   : > { %1150 = vrot.lane.b32.xlu1 %v2315_v42, %s2835_s8  ;;  %v656_v4 = vor.u32 %v655_v52, %v652_v48  ;;  %v671_v6 = vrot.slane %v669_v54, 5  ;;  %v639_v7 = vshrl.u32 %v3235_v46, 16  ;;  %v645_v8 = vshll.u32 %v297_v50, 16 }
  0x6e   : > { %v666_v10 = vor.u32 %v665_v57, %v661_v53  ;;  %v628_v11 = vrot.slane %v626_v58, 4  ;;  %v631_v12 = vrot.slane %v629_v60, 5  ;;  %v637_v13 = vrot.slane %v635_v62, 5  ;;  %v306_v57 = vld [vmem:[%s2926_s7 + $0xc8] sm:$0x1] }
  0x6f   : > { %v657_v18 = vrot.slane %v656_v4, 4  ;;  %v641_v20 = vrot.slane %v639_v7, 4  ;;  %v647_v24 = vrot.slane %v645_v8, 5  ;;  %v2263_v26 = vrot.slane %v3209_v14, 9  ;;  %v3278_v7 = vld [vmem:[%s2926_s7 + $0xb4] sm:$0xf] }
  0x70   : > { %1148 = vrot.lane.b32.xlu0 %v2314_v51, %s2835_s8  ;;  %v667_v27 = vrot.slane %v666_v10, 4  ;;  %v632_v30 = vor.u32 %v631_v12, %v628_v11  ;;  %v902_v31 = vrot.slane %v3216_v25, 5  ;;  %v905_v35 = vrot.slane %v300_v39, 5  ;;  %v3262_v39 = vld [vmem:[%s2926_s7 + $0xc4] sm:$0xf] }
  0x71   : > { %v662_v29 = vsel %vm2958_vm5, %v657_v18, %v661_v53  ;;  %v642_v36 = vor.u32 %v641_v20, %v637_v13  ;;  %v2262_v37 = vrot.slane %v3232_v45, 9  ;;  %v895_v40 = vrot.slane %v3235_v46, 5  ;;  %v3281_v8 = vld [vmem:[%s2926_s7 + $0xb8] sm:$0xf] }
  0x72   : > { %v672_v42 = vsel %vm2958_vm5, %v667_v27, %v671_v6  ;;  %v633_v43 = vrot.slane %v632_v30, 4  ;;  %v903_v44 = vsel %vm2928_vm2, %v2263_v26, %v902_v31  ;;  %v904_v47 = vrot.slane %v902_v31, 4 }
  0x73   : > { %v2299_v38 = vcombine.low %v662_v29, %v672_v42  ;;  %v643_v48 = vrot.slane %v642_v36, 4  ;;  %v896_v49 = vsel %vm2928_vm2, %v2262_v37, %v895_v40  ;;  %v897_v51 = vrot.slane %v895_v40, 4 }
  0x74   : > { %v638_v52 = vsel %vm2958_vm5, %v633_v43, %v637_v13  ;;  %v906_v53 = vsel %vm2928_vm2, %v904_v47, %v905_v35  ;;  %v898_v54 = vrot.slane %v297_v50, 5  ;;  %v698_v58 = vshrl.u32 %v3255_v41, 16  ;;  %v303_v13 = vld [vmem:[%s2926_s7 + $0xbc] sm:$0x1] }
  0x75   : > { %1064 = vrot.lane.b32.xlu1 %v2299_v38, %s2836_s9  ;;  %v648_v60 = vsel %vm2958_vm5, %v643_v48, %v647_v24  ;;  %v2317_v62 = vcombine.low %v903_v44, %v906_v53  ;;  %v701_v4 = vshll.u32 %v3255_v41, 16  ;;  %v707_v6 = vshll.u32 %v3262_v39, 16 }
  0x76   : > { %v2298_v10 = vcombine.low %v638_v52, %v648_v60  ;;  %v899_v50 = vsel %vm2928_vm2, %v897_v51, %v898_v54  ;;  %v700_v11 = vrot.slane %v698_v58, 4  ;;  %v711_v12 = vshrl.u32 %v3262_v39, 16 }
  0x77   : > { %v2316_v18 = vcombine.low %v896_v49, %v899_v50  ;;  %v703_v20 = vrot.slane %v701_v4, 5  ;;  %v709_v24 = vrot.slane %v707_v6, 5  ;;  %v717_v26 = vshll.u32 %v306_v57, 16 }
  0x78   : > { %1062 = vrot.lane.b32.xlu0 %v2298_v10, %s2836_s9  ;;  %v713_v27 = vrot.slane %v711_v12, 4  ;;  %v674_v30 = vshrl.u32 %v3278_v7, 16  ;;  %v677_v31 = vshll.u32 %v3278_v7, 16  ;;  %v683_v35 = vshll.u32 %v3281_v8, 16  ;;  %v3301_v10 = vld [vmem:[%s2926_s7 + $0xcc] sm:$0xf] }
  0x79   : > { %1154 = vrot.lane.b32.xlu1 %v2317_v62, %s2835_s8  ;;  %v704_v29 = vor.u32 %v703_v20, %v700_v11  ;;  %v719_v36 = vrot.slane %v717_v26, 5  ;;  %v687_v37 = vshrl.u32 %v3281_v8, 16  ;;  %v693_v40 = vshll.u32 %v303_v13, 16 }
  0x7a   : > { %v714_v42 = vor.u32 %v713_v27, %v709_v24  ;;  %v676_v43 = vrot.slane %v674_v30, 4  ;;  %v679_v44 = vrot.slane %v677_v31, 5  ;;  %v685_v47 = vrot.slane %v683_v35, 5 }
  0x7b   : > { %v705_v38 = vrot.slane %v704_v29, 4  ;;  %v689_v48 = vrot.slane %v687_v37, 4  ;;  %v695_v49 = vrot.slane %v693_v40, 5  ;;  %v2265_v51 = vrot.slane %v3255_v41, 9  ;;  %v309_v29 = vld [vmem:[%s2926_s7 + $0xd4] sm:$0x1] }
  0x7c   : > { %1152 = vrot.lane.b32.xlu0 %v2316_v18, %s2835_s8  ;;  %v715_v52 = vrot.slane %v714_v42, 4  ;;  %v680_v53 = vor.u32 %v679_v44, %v676_v43  ;;  %v916_v54 = vrot.slane %v3262_v39, 5  ;;  %v919_v58 = vrot.slane %v306_v57, 5  ;;  %v3308_v57 = vld [vmem:[%s2926_s7 + $0xd0] sm:$0xf] }
  0x7d   : > { %v710_v60 = vsel %vm2958_vm5, %v705_v38, %v709_v24  ;;  %v690_v62 = vor.u32 %v689_v48, %v685_v47  ;;  %v2264_v4 = vrot.slane %v3278_v7, 9  ;;  %v909_v6 = vrot.slane %v3281_v8, 5 }
  0x7e   : > { %v720_v50 = vsel %vm2958_vm5, %v715_v52, %v719_v36  ;;  %v681_v11 = vrot.slane %v680_v53, 4  ;;  %v917_v12 = vsel %vm2928_vm2, %v2265_v51, %v916_v54  ;;  %v918_v18 = vrot.slane %v916_v54, 4 }
  0x7f   : > { %v2301_v20 = vcombine.low %v710_v60, %v720_v50  ;;  %v691_v24 = vrot.slane %v690_v62, 4  ;;  %v910_v26 = vsel %vm2928_vm2, %v2264_v4, %v909_v6  ;;  %v911_v27 = vrot.slane %v909_v6, 4 }
  0x80   : > { %v686_v30 = vsel %vm2958_vm5, %v681_v11, %v685_v47  ;;  %v920_v31 = vsel %vm2928_vm2, %v918_v18, %v919_v58  ;;  %v912_v35 = vrot.slane %v303_v13, 5  ;;  %v722_v36 = vshrl.u32 %v3301_v10, 16  ;;  %v2731_v18 = vld [vmem:[%s3737_s1 + $0x8] sm:$0x1f]  }
  0x81   : > { %1068 = vrot.lane.b32.xlu1 %v2301_v20, %s2836_s9  ;;  %v696_v37 = vsel %vm2958_vm5, %v691_v24, %v695_v49  ;;  %v2319_v40 = vcombine.low %v917_v12, %v920_v31  ;;  %v725_v42 = vshll.u32 %v3301_v10, 16  ;;  %v731_v43 = vshll.u32 %v3308_v57, 16  ;;  %v2732_v20 = vld [vmem:[%s3737_s1] sm:$0x1f]  }
  0x82   : > { %v2300_v44 = vcombine.low %v686_v30, %v696_v37  ;;  %v913_v47 = vsel %vm2928_vm2, %v911_v27, %v912_v35  ;;  %v724_v38 = vrot.slane %v722_v36, 4  ;;  %v735_v13 = vshrl.u32 %v3308_v57, 16  ;;  %v2733_v27 = vld [vmem:[%s3737_s1 + $0x10] sm:$0x1f]  }
  0x83   : > { %v2318_v48 = vcombine.low %v910_v26, %v913_v47  ;;  %v727_v51 = vrot.slane %v725_v42, 5  ;;  %v733_v52 = vrot.slane %v731_v43, 5  ;;  %v741_v53 = vshll.u32 %v309_v29, 16 }
  0x84   : > { %1066 = vrot.lane.b32.xlu0 %v2300_v44, %s2836_s9  ;;  %v737_v54 = vrot.slane %v735_v13, 4  ;;  %v2266_v49 = vrot.slane %v3301_v10, 9  ;;  %v923_v58 = vrot.slane %v3308_v57, 5  ;;  %v926_v60 = vrot.slane %v309_v29, 5 }
  0x85   : > { %1158 = vrot.lane.b32.xlu1 %v2319_v40, %s2835_s8  ;;  %v728_v62 = vor.u32 %v727_v51, %v724_v38  ;;  %v743_v6 = vrot.slane %v741_v53, 5  ;;  %v2837_v35 = vmov 65535   ;;  %v2277_v44 = vcombine.low %v3117_v56, %v3124_v1 }
  0x86   : > { %v738_v4 = vor.u32 %v737_v54, %v733_v52  ;;  %v924_v50 = vsel %vm2928_vm2, %v2266_v49, %v923_v58  ;;  %v925_v11 = vrot.slane %v923_v58, 4  ;;  %v1299_v29 = vsel %vm1297_vm6, 4294967295, %v2837_v35  ;;  %v2749_v54 = vld [vmem:[%s2926_s7] sm:$0xf]  ;;  %v2750_v49 = vld [vmem:[%s2926_s7 + $0x4] sm:$0xf] }
  0x87   : > { %v729_v12 = vrot.slane %v728_v62, 4  ;;  %v1300_v37 = vsel %vm1298_vm7, %v1299_v29, 0  ;;  %v2276_v47 = vcombine.low %v3140_v21, %v3143_v22  ;;  %v2279_v33 = vcombine.low %v3163_v3, %v3170_v9 }
  0x88   : > { %1156 = vrot.lane.b32.xlu0 %v2318_v48, %s2835_s8  ;;  %v739_v24 = vrot.slane %v738_v4, 4  ;;  %v927_v26 = vsel %vm2928_vm2, %v925_v11, %v926_v60  ;;  %v1302_v0 = vand.u32 %v2731_v18, %v1300_v37  ;;  %v1473_v42 = vand.u32 %v2732_v20, %v1300_v37  ;;  %v2751_v11 = vld [vmem:[%s2926_s7 + $0x18] sm:$0xf]  ;;  %v2753_v20 = vld [vmem:[%s2926_s7 + $0xc] sm:$0xf] }
  0x89   : > { %v734_v30 = vsel %vm2958_vm5, %v729_v12, %v733_v52  ;;  %v2320_v31 = vcombine.low %v924_v50, %v927_v26  ;;  %v1647_v43 = vand.u32 %v2733_v27, %v1300_v37  ;;  %v2278_v38 = vcombine.low %v3186_v32, %v3189_v34  ;;  %v2752_v12 = vld [vmem:[%s2926_s7 + $0x1c] sm:$0xf] }
  0x8a   : > { %v744_v36 = vsel %vm2958_vm5, %v739_v24, %v743_v6  ;;  %2499 = vmatprep.subr.bf16.mxu1 %v1302_v0  ;;  %2533 = vmatprep.subr.bf16.mxu0 %v1473_v42  ;;  %v2281_v13 = vcombine.low %v3209_v14, %v3216_v25  ;;  %v2280_v48 = vcombine.low %v3232_v45, %v3235_v46  ;;  %v2754_v24 = vld [vmem:[%s2926_s7 + $0x10] sm:$0xf]  ;;  %s2447_s7 = sshll.u32 %s2825_s18, 11  ;;  %s3690_s18 = scalar_lea.sflag [#allocation3], %s237_s26 }
  0x8b   : > { %v2302_v40 = vcombine.low %v734_v30, %v744_v36  ;;  %1160 = vrot.lane.b32.xlu1 %v2320_v31, %s2835_s8  ;;  %2500 = vmatpush3.bf16.msra.mxu1 %v1302_v0  ;;  %v2283_v51 = vcombine.low %v3255_v41, %v3262_v39  ;;  %v2282_v52 = vcombine.low %v3278_v7, %v3281_v8  ;;  %s2128_s8 = sshll.u32 %s3534_s6, 4  ;;  %s3678_s11 = scalar_lea.hbm %s3740_s4, %s2447_s7  ;;  %s3680_s8 = int_to_ptr.vmem [resolvable:$true] %s2128_s8 }
  0x8c   : > { %2534 = vmatpush3.bf16.msra.mxu0 %v1473_v42  ;;  %2601 = vmatprep.subr.bf16.mxu1 %v1473_v42  ;;  %v2284_v53 = vcombine.low %v3301_v10, %v3308_v57  ;;  %v2267_v58 = vcombine.low %v2749_v54, %v2750_v49  ;;  %v2269_v18 = vcombine.low %v2751_v11, %v2752_v12  ;;  %s2755_s12 = scalar_lea.vmem %s3680_s8, 2048  ;;  %p2762_p1 = scmp.lt.s32.totalorder %s3680_s8, %s2760_s14 }
  0x8d   : > { %1070 = vrot.lane.b32.xlu0 %v2302_v40, %s2836_s9  ;;  %2567 = vmatprep.subr.bf16.mxu0 %v1647_v43  ;;  %v2268_v26 = vcombine.low %v2753_v20, %v2754_v24  ;;  %v2271_v0 = vcombine.low %v2978_v63, %v2984_v5  ;;  %v2270_v54 = vcombine.low %v2998_v19, %v3006_v28  ;;  %p2756_p12 = scmp.ne.s32.totalorder %s3680_s8, %s2755_s12  ;;  %p2763_p2 = scmp.lt.s32.totalorder %s2761_s21, %s2755_s12 }
  0x8e   : > { %v2273_v5 = vcombine.low %v3025_v59, %v3032_v2  ;;  %v2272_v19 = vcombine.low %v3048_v17, %v3054_v23  ;;  %v2275_v2 = vcombine.low %v3071_v55, %v3078_v61  ;;  %v2274_v17 = vcombine.low %v3094_v15, %v3097_v16 }
  0x8f   : > { %p2757_p13 = pnand %p2756_p12, %p2906_p4  ;;  %p2764_p3 = por %p2763_p2, %p2762_p1 }
  0x91   : > { %p2758_p0 = pneg %p2757_p13 }
  0x93   : > { %p2765_p5 = pnand %p2764_p3, %p2758_p0 }
  0x95   : > { %v1127_v60 = vpop.permute.xlu1 %1126 }
  0x9a   : > { %v1037_v62 = vpop.permute.xlu0 %1036 }
  0x9b   : > { %v1165_v4 = vsel %vm1162_vm8, %v2267_v58, %v1037_v62 }
  0x9c   : > { %v1219_v6 = vsel %vm1217_vm9, %v1165_v4, %v1127_v60 }
  0x9d   : > { %2535 = vmatprep.mubr.msk.bf16.mxu0 %vm1264_vm10, %v1219_v6 }
  0x9e   : > { %v1041_v50 = vpop.permute.xlu1 %1040 }
  0x9f   : > { %v1171_v31 = vsel %vm1162_vm8, %v2269_v18, %v1041_v50 }
  0xa2   : > { %v1131_v30 = vpop.permute.xlu1 %1130 }
  0xa3   : > { %v1039_v27 = vpop.permute.xlu0 %1038  ;;  %v1223_v37 = vsel %vm1217_vm9, %v1171_v31, %v1131_v30 }
  0xa4   : > { %v1168_v35 = vsel %vm1162_vm8, %v2268_v26, %v1039_v27 }
  0xa7   : > { %v1129_v29 = vpop.permute.xlu0 %1128 }
  0xa8   : > { %v1221_v36 = vsel %vm1217_vm9, %v1168_v35, %v1129_v29 }
  0xa9   : > { %2501 = vmatprep.mubr.msk.bf16.mxu1 %vm1264_vm10, %v1221_v36  ;;  %2536 = vmatmul.mubr.msk.bf16.vlgmr.msra.gmra.mrb[0].mxu0 %vm1264_vm10, %v1221_v36 }
  0xaa   : > { %2502 = vmatmul.mubr.msk.bf16.vlgmr.msra.gmra.mrb[0].mxu1 %vm1264_vm10, %v1223_v37  ;;  %2539 = vmatprep.mubr.msk.bf16.mxu0 %vm1264_vm10, %v1223_v37 }
  0xab   : > { %v1045_v40 = vpop.permute.xlu1 %1044  ;;  %2602 = vmatpush3.bf16.msra.mxu1 %v1473_v42  ;;  %2568 = vmatpush3.bf16.msra.mxu0 %v1647_v43 }
  0xac   : > { %v1177_v58 = vsel %vm1162_vm8, %v2271_v0, %v1045_v40 }
  0xae   : > { %v1043_v49 = vpop.permute.xlu0 %1042 }
  0xaf   : > { %v1135_v60 = vpop.permute.xlu1 %1134  ;;  %v1174_v62 = vsel %vm1162_vm8, %v2270_v54, %v1043_v49 }
  0xb0   : > { %v1227_v50 = vsel %vm1217_vm9, %v1177_v58, %v1135_v60 }
  0xb2   : > { %v1133_v4 = vpop.permute.xlu0 %1132 }
  0xb3   : > { %v1225_v6 = vsel %vm1217_vm9, %v1174_v62, %v1133_v4 }
  0xb4   : > { %2505 = vmatprep.mubr.msk.bf16.mxu1 %vm1264_vm10, %v1225_v6  ;;  %2540 = vmatmul.mubr.msk.bf16.gmra.mrb[4].mxu0 %vm1264_vm10, %v1225_v6 }
  0xb5   : > { %2506 = vmatmul.mubr.msk.bf16.gmra.mrb[4].mxu1 %vm1264_vm10, %v1227_v50  ;;  %2543 = vmatprep.mubr.msk.bf16.mxu0 %vm1264_vm10, %v1227_v50 }
  0xb7   : > { %v1049_v63 = vpop.permute.xlu1 %1048 }
  0xb8   : > { %v1183_v42 = vsel %vm1162_vm8, %v2273_v5, %v1049_v63 }
  0xba   : > { %v1047_v28 = vpop.permute.xlu0 %1046 }
  0xbb   : > { %v1139_v43 = vpop.permute.xlu1 %1138  ;;  %v1180_v11 = vsel %vm1162_vm8, %v2272_v19, %v1047_v28 }
  0xbc   : > { %v1231_v20 = vsel %vm1217_vm9, %v1183_v42, %v1139_v43 }
  0xbe   : > { %v1137_v12 = vpop.permute.xlu0 %1136 }
  0xbf   : > { %v1229_v18 = vsel %vm1217_vm9, %v1180_v11, %v1137_v12 }
  0xc0   : > { %2509 = vmatprep.mubr.msk.bf16.mxu1 %vm1264_vm10, %v1229_v18  ;;  %2544 = vmatmul.mubr.msk.bf16.gmra.mrb[8].mxu0 %vm1264_vm10, %v1229_v18 }
  0xc1   : > { %2510 = vmatmul.mubr.msk.bf16.gmra.mrb[8].mxu1 %vm1264_vm10, %v1231_v20  ;;  %2547 = vmatprep.mubr.msk.bf16.mxu0 %vm1264_vm10, %v1231_v20 }
  0xc3   : > { %v1053_v59 = vpop.permute.xlu1 %1052 }
  0xc4   : > { %v1189_v24 = vsel %vm1162_vm8, %v2275_v2, %v1053_v59 }
  0xc6   : > { %v1051_v23 = vpop.permute.xlu0 %1050 }
  0xc7   : > { %v1143_v26 = vpop.permute.xlu1 %1142  ;;  %v1186_v27 = vsel %vm1162_vm8, %v2274_v17, %v1051_v23  ;;  %v3522_v17 = vld [vmem:[%s3739_s3] ss:$0 sm:$0xff] }
  0xc8   : > { %v1235_v35 = vsel %vm1217_vm9, %v1189_v24, %v1143_v26 }
  0xca   : > { %v1141_v30 = vpop.permute.xlu0 %1140 }
  0xcb   : > { %v1233_v31 = vsel %vm1217_vm9, %v1186_v27, %v1141_v30 }
  0xcc   : > { %2513 = vmatprep.mubr.msk.bf16.mxu1 %vm1264_vm10, %v1233_v31  ;;  %2548 = vmatmul.mubr.msk.bf16.gmra.mrb[12].mxu0 %vm1264_vm10, %v1233_v31 }
  0xcd   : > { %2514 = vmatmul.mubr.msk.bf16.gmra.mrb[12].mxu1 %vm1264_vm10, %v1235_v35  ;;  %2569 = vmatprep.mubr.msk.bf16.mxu0 %vm1264_vm10, %v1223_v37 }
  0xcf   : > { %v1057_v55 = vpop.permute.xlu1 %1056 }
  0xd0   : > { %v1195_v15 = vsel %vm1162_vm8, %v2277_v44, %v1057_v55 }
  0xd2   : > { %v1055_v61 = vpop.permute.xlu0 %1054 }
  0xd3   : > { %v1147_v16 = vpop.permute.xlu1 %1146  ;;  %v1192_v29 = vsel %vm1162_vm8, %v2276_v47, %v1055_v61 }
  0xd4   : > { %2570 = vmatmul.mubr.msk.bf16.vlgmr.msra.gmra.mrb[0].mxu0 %vm1264_vm10, %v1225_v6  ;;  %v1239_v40 = vsel %vm1217_vm9, %v1195_v15, %v1147_v16 }
  0xd5   : > { %2573 = vmatprep.mubr.msk.bf16.mxu0 %vm1264_vm10, %v1227_v50 }
  0xd6   : > { %v1145_v36 = vpop.permute.xlu0 %1144 }
  0xd7   : > { %v1237_v37 = vsel %vm1217_vm9, %v1192_v29, %v1145_v36 }
  0xd8   : > { %2517 = vmatprep.mubr.msk.bf16.mxu1 %vm1264_vm10, %v1237_v37 }
  0xd9   : > { %2518 = vmatmul.mubr.msk.bf16.gmra.mrb[16].mxu1 %vm1264_vm10, %v1239_v40 }
  0xdb   : > { %v1061_v56 = vpop.permute.xlu1 %1060 }
  0xdc   : > { %2574 = vmatmul.mubr.msk.bf16.gmra.mrb[4].mxu0 %vm1264_vm10, %v1229_v18  ;;  %v1201_v21 = vsel %vm1162_vm8, %v2279_v33, %v1061_v56 }
  0xdd   : > { %2577 = vmatprep.mubr.msk.bf16.mxu0 %vm1264_vm10, %v1231_v20  ;;  %v3516_v20 = vld [vmem:[%s3738_s2] ss:$0 sm:$0xff] }
  0xde   : > { %v1059_v1 = vpop.permute.xlu0 %1058 }
  0xdf   : > { %v1151_v22 = vpop.permute.xlu1 %1150  ;;  %v1198_v44 = vsel %vm1162_vm8, %v2278_v38, %v1059_v1 }
  0xe0   : > { %v1243_v54 = vsel %vm1217_vm9, %v1201_v21, %v1151_v22 }
  0xe2   : > { %v1149_v47 = vpop.permute.xlu0 %1148 }
  0xe3   : > { %v1241_v0 = vsel %vm1217_vm9, %v1198_v44, %v1149_v47 }
  0xe4   : > { %2521 = vmatprep.mubr.msk.bf16.mxu1 %vm1264_vm10, %v1241_v0  ;;  %2578 = vmatmul.mubr.msk.bf16.gmra.mrb[8].mxu0 %vm1264_vm10, %v1233_v31 }
  0xe5   : > { %2522 = vmatmul.mubr.msk.bf16.gmra.mrb[20].mxu1 %vm1264_vm10, %v1243_v54  ;;  %2581 = vmatprep.mubr.msk.bf16.mxu0 %vm1264_vm10, %v1235_v35 }
  0xe7   : > { %v1065_v3 = vpop.permute.xlu1 %1064 }
  0xe8   : > { %v1207_v32 = vsel %vm1162_vm8, %v2281_v13, %v1065_v3 }
  0xea   : > { %v1063_v9 = vpop.permute.xlu0 %1062 }
  0xeb   : > { %v1155_v34 = vpop.permute.xlu1 %1154  ;;  %v1204_v33 = vsel %vm1162_vm8, %v2280_v48, %v1063_v9 }
  0xec   : > { %2582 = vmatmul.mubr.msk.bf16.gmra.mrb[12].mxu0 %vm1264_vm10, %v1237_v37  ;;  %v1247_v58 = vsel %vm1217_vm9, %v1207_v32, %v1155_v34 }
  0xed   : > { %2585 = vmatprep.mubr.msk.bf16.mxu0 %vm1264_vm10, %v1239_v40 }
  0xee   : > { %v1153_v38 = vpop.permute.xlu0 %1152 }
  0xef   : > { %v1245_v49 = vsel %vm1217_vm9, %v1204_v33, %v1153_v38 }
  0xf0   : > { %2525 = vmatprep.mubr.msk.bf16.mxu1 %vm1264_vm10, %v1245_v49 }
  0xf1   : > { %2526 = vmatmul.mubr.msk.bf16.gmra.mrb[24].mxu1 %vm1264_vm10, %v1247_v58 }
  0xf3   : > { %v1069_v14 = vpop.permute.xlu1 %1068 }
  0xf4   : > { %2586 = vmatmul.mubr.msk.bf16.gmra.mrb[16].mxu0 %vm1264_vm10, %v1241_v0  ;;  %v1213_v45 = vsel %vm1162_vm8, %v2283_v51, %v1069_v14 }
  0xf5   : > { %2589 = vmatprep.mubr.msk.bf16.mxu0 %vm1264_vm10, %v1243_v54 }
  0xf6   : > { %v1067_v25 = vpop.permute.xlu0 %1066 }
  0xf7   : > { %v1159_v46 = vpop.permute.xlu1 %1158  ;;  %v1210_v13 = vsel %vm1162_vm8, %v2282_v52, %v1067_v25 }
  0xf8   : > { %v1251_v62 = vsel %vm1217_vm9, %v1213_v45, %v1159_v46 }
  0xfa   : > { %v1157_v48 = vpop.permute.xlu0 %1156 }
  0xfb   : > { %v1249_v60 = vsel %vm1217_vm9, %v1210_v13, %v1157_v48 }
  0xfc   : > { %2529 = vmatprep.mubr.msk.bf16.mxu1 %vm1264_vm10, %v1249_v60  ;;  %2590 = vmatmul.mubr.msk.bf16.gmra.mrb[20].mxu0 %vm1264_vm10, %v1245_v49 }
  0xfd   : > { %2530 = vmatmul.mubr.msk.bf16.gmra.mrb[28].mxu1 %vm1264_vm10, %v1251_v62  ;;  %2593 = vmatprep.mubr.msk.bf16.mxu0 %vm1264_vm10, %v1247_v58  ;;  %v1161_v7 = vpop.permute.xlu1 %1160 }
  0xfe   : > { %2551 = vmatprep.mubr.msk.bf16.mxu1 %vm1264_vm10, %v1235_v35 }
  0xff   : > { %v1071_v41 = vpop.permute.xlu0 %1070 }
 0x100   : > { %v1216_v39 = vsel %vm1162_vm8, %v2284_v53, %v1071_v41 }
 0x101   : > { %v1253_v8 = vsel %vm1217_vm9, %v1216_v39, %v1161_v7 }
 0x104   : > { %2594 = vmatmul.mubr.msk.bf16.gmra.mrb[24].mxu0 %vm1264_vm10, %v1249_v60 }
 0x105   : > { %2552 = vmatmul.mubr.msk.bf16.vlgmr.msra.gmra.mrb[16].mxu1 %vm1264_vm10, %v1237_v37  ;;  %2597 = vmatprep.mubr.msk.bf16.mxu0 %vm1264_vm10, %v1251_v62 }
 0x106   : > { %2555 = vmatprep.mubr.msk.bf16.mxu1 %vm1264_vm10, %v1239_v40 }
 0x10c   : > { %2598 = vmatmul.mubr.msk.bf16.gmra.mrb[28].mxu0 %vm1264_vm10, %v1253_v8 }
 0x10d   : > { %2556 = vmatmul.mubr.msk.bf16.gmra.mrb[20].mxu1 %vm1264_vm10, %v1241_v0 }
 0x10e   : > { %2559 = vmatprep.mubr.msk.bf16.mxu1 %vm1264_vm10, %v1243_v54 }
 0x115   : > { %2560 = vmatmul.mubr.msk.bf16.gmra.mrb[24].mxu1 %vm1264_vm10, %v1245_v49 }
 0x116   : > { %2563 = vmatprep.mubr.msk.bf16.mxu1 %vm1264_vm10, %v1247_v58 }
 0x11d   : > { %2564 = vmatmul.mubr.msk.bf16.gmra.mrb[28].mxu1 %vm1264_vm10, %v1249_v60 }
 0x17d   : > { %v2503_v51 = vpop.f32.mrb[0].mxu1 }
 0x17e   : > { %v1338_v52 = vpop.f32.mrb[1].mxu1 }
 0x17f   : > { %v2504_v10 = vpop.f32.mrb[2].mxu1 }
 0x180   : > { %v1341_v57 = vpop.f32.mrb[3].mxu1 }
 0x188   : > { %v2507_v53 = vpop.f32.mrb[4].mxu1 }
 0x189   : > { %v1354_v4 = vpop.f32.mrb[5].mxu1 }
 0x18a   : > { %v2508_v6 = vpop.f32.mrb[6].mxu1 }
 0x18b   : > { %v1357_v50 = vpop.f32.mrb[7].mxu1 }
 0x194   : > { %v3497_v63 = vpop.f32.mrb[8].mxu1 }
 0x195   : > { %v3499_v5 = vpop.f32.mrb[9].mxu1 }
 0x196   : > { %v3501_v19 = vpop.f32.mrb[10].mxu1 }
 0x197   : > { %v3503_v28 = vpop.f32.mrb[11].mxu1 }
 0x1a0   : > { %v3505_v42 = vpop.f32.mrb[12].mxu1 }
 0x1a1   : > { %v3507_v43 = vpop.f32.mrb[13].mxu1 }
 0x1a2   : > { %v3509_v11 = vpop.f32.mrb[14].mxu1 }
 0x1a3   : > { %v3511_v12 = vpop.f32.mrb[15].mxu1 }
 0x1a7   : > { %v2571_v18 = vpop.f32.mrb[0].mxu0 }
 0x1a8   : > { %v2603_v59 = vadd.f32 %v2571_v18, %v2503_v51  ;;  %v1683_v2 = vpop.f32.mrb[1].mxu0 }
 0x1a9   : > { %v2604_v23 = vadd.f32 %v1683_v2, %v1338_v52  ;;  %v2572_v24 = vpop.f32.mrb[2].mxu0 }
 0x1aa   : > { %v1851_v26 = vmul.f32 %v2603_v59, %v3516_v20  ;;  %v2605_v27 = vadd.f32 %v2572_v24, %v2504_v10  ;;  %v1686_v30 = vpop.f32.mrb[3].mxu0 }
 0x1ab   : > { %v1849_v31 = vmul.f32 %v2604_v23, %v3516_v20  ;;  %v2606_v35 = vadd.f32 %v1686_v30, %v1341_v57 }
 0x1ac   : > { %v1890_v55 = vadd.f32 %v3522_v17, %v1851_v26  ;;  %v1852_v61 = vmul.f32 %v2605_v27, %v3516_v20 }
 0x1ad   : > { %v1888_v15 = vadd.f32 %v3522_v17, %v1849_v31  ;;  %v1850_v16 = vmul.f32 %v2606_v35, %v3516_v20 }
 0x1ae   : > { %v1922_v29 = vmax.f32 %v1890_v55, 0.0  ;;  %v1891_v36 = vadd.f32 %v3522_v17, %v1852_v61 }
 0x1af   : > { %v1920_v37 = vmax.f32 %v1888_v15, 0.0  ;;  %v1889_v40 = vadd.f32 %v3522_v17, %v1850_v16  ;;  %v2575_v56 = vpop.f32.mrb[4].mxu0 }
 0x1b0   : > { %v2417_v1 = vpack.c.bf16 %v1922_v29, %v1922_v29  ;;  %v1923_v21 = vmax.f32 %v1891_v36, 0.0  ;;  %v2607_v22 = vadd.f32 %v2575_v56, %v2507_v53  ;;  %v1699_v44 = vpop.f32.mrb[5].mxu0 }
 0x1b1   : > { %v2415_v47 = vpack.c.bf16 %v1920_v37, %v1920_v37  ;;  %v1921_v0 = vmax.f32 %v1889_v40, 0.0  ;;  %v2608_v54 = vadd.f32 %v1699_v44, %v1354_v4  ;;  %v2576_v3 = vpop.f32.mrb[6].mxu0 }
 0x1b2   : > { %2083 = vst.msk [vmem:[%s3534_s6 + $0x8] sm:$0xf] %vm2080_vm11, %v2417_v1  ;;  %v2418_v9 = vpack.c.bf16 %v1923_v21, %v1923_v21  ;;  %v1855_v32 = vmul.f32 %v2607_v22, %v3516_v20  ;;  %v2609_v34 = vadd.f32 %v2576_v3, %v2508_v6  ;;  %v1702_v33 = vpop.f32.mrb[7].mxu0 }
 0x1b3   : > { %2081 = vst.msk [vmem:[%s3534_s6] sm:$0xf] %vm2080_vm11, %v2415_v47  ;;  %v2416_v38 = vpack.c.bf16 %v1921_v0, %v1921_v0  ;;  %v1853_v49 = vmul.f32 %v2608_v54, %v3516_v20  ;;  %v2610_v58 = vadd.f32 %v1702_v33, %v1357_v50 }
 0x1b4   : > { %2084 = vst.msk [vmem:[%s3534_s6 + $0xc] sm:$0xf] %vm2080_vm11, %v2418_v9  ;;  %v1894_v14 = vadd.f32 %v3522_v17, %v1855_v32  ;;  %v1856_v25 = vmul.f32 %v2609_v34, %v3516_v20 }
 0x1b5   : > { %2082 = vst.msk [vmem:[%s3534_s6 + $0x4] sm:$0xf] %vm2080_vm11, %v2416_v38  ;;  %v1892_v45 = vadd.f32 %v3522_v17, %v1853_v49  ;;  %v1854_v46 = vmul.f32 %v2610_v58, %v3516_v20 }
 0x1b6   : > { %v1926_v13 = vmax.f32 %v1894_v14, 0.0  ;;  %v1895_v48 = vadd.f32 %v3522_v17, %v1856_v25 }
 0x1b7   : > { %v1924_v60 = vmax.f32 %v1892_v45, 0.0  ;;  %v1893_v62 = vadd.f32 %v3522_v17, %v1854_v46  ;;  %v2579_v41 = vpop.f32.mrb[8].mxu0 }
 0x1b8   : > { %v2421_v39 = vpack.c.bf16 %v1926_v13, %v1926_v13  ;;  %v1927_v7 = vmax.f32 %v1895_v48, 0.0  ;;  %v2611_v8 = vadd.f32 %v2579_v41, %v3497_v63  ;;  %v1715_v51 = vpop.f32.mrb[9].mxu0 }
 0x1b9   : > { %v2419_v52 = vpack.c.bf16 %v1924_v60, %v1924_v60  ;;  %v1925_v10 = vmax.f32 %v1893_v62, 0.0  ;;  %v2612_v57 = vadd.f32 %v1715_v51, %v3499_v5  ;;  %v2580_v53 = vpop.f32.mrb[10].mxu0 }
 0x1ba   : > { %2087 = vst.msk [vmem:[%s3534_s6 + $0x18] sm:$0xf] %vm2080_vm11, %v2421_v39  ;;  %v2422_v4 = vpack.c.bf16 %v1927_v7, %v1927_v7  ;;  %v1859_v6 = vmul.f32 %v2611_v8, %v3516_v20  ;;  %v2613_v50 = vadd.f32 %v2580_v53, %v3501_v19  ;;  %v1718_v18 = vpop.f32.mrb[11].mxu0 }
 0x1bb   : > { %2085 = vst.msk [vmem:[%s3534_s6 + $0x10] sm:$0xf] %vm2080_vm11, %v2419_v52  ;;  %v2420_v59 = vpack.c.bf16 %v1925_v10, %v1925_v10  ;;  %v1857_v63 = vmul.f32 %v2612_v57, %v3516_v20  ;;  %v2614_v2 = vadd.f32 %v1718_v18, %v3503_v28 }
 0x1bc   : > { %2088 = vst.msk [vmem:[%s3534_s6 + $0x1c] sm:$0xf] %vm2080_vm11, %v2422_v4  ;;  %v1898_v5 = vadd.f32 %v3522_v17, %v1859_v6  ;;  %v1860_v23 = vmul.f32 %v2613_v50, %v3516_v20 }
 0x1bd   : > { %2086 = vst.msk [vmem:[%s3534_s6 + $0x14] sm:$0xf] %vm2080_vm11, %v2420_v59  ;;  %v1896_v24 = vadd.f32 %v3522_v17, %v1857_v63  ;;  %v1858_v19 = vmul.f32 %v2614_v2, %v3516_v20 }
 0x1be   : > { %v1930_v26 = vmax.f32 %v1898_v5, 0.0  ;;  %v1899_v27 = vadd.f32 %v3522_v17, %v1860_v23 }
 0x1bf   : > { %v1928_v30 = vmax.f32 %v1896_v24, 0.0  ;;  %v1897_v28 = vadd.f32 %v3522_v17, %v1858_v19  ;;  %v2583_v31 = vpop.f32.mrb[12].mxu0 }
 0x1c0   : > { %v2425_v35 = vpack.c.bf16 %v1930_v26, %v1930_v26  ;;  %v1931_v55 = vmax.f32 %v1899_v27, 0.0  ;;  %v2615_v61 = vadd.f32 %v2583_v31, %v3505_v42  ;;  %v1731_v15 = vpop.f32.mrb[13].mxu0 }
 0x1c1   : > { %v2423_v16 = vpack.c.bf16 %v1928_v30, %v1928_v30  ;;  %v1929_v29 = vmax.f32 %v1897_v28, 0.0  ;;  %v2616_v36 = vadd.f32 %v1731_v15, %v3507_v43  ;;  %v2584_v37 = vpop.f32.mrb[14].mxu0 }
 0x1c2   : > { %2091 = vst.msk [vmem:[%s3534_s6 + $0x28] sm:$0xf] %vm2080_vm11, %v2425_v35  ;;  %v2426_v40 = vpack.c.bf16 %v1931_v55, %v1931_v55  ;;  %v1863_v56 = vmul.f32 %v2615_v61, %v3516_v20  ;;  %v2617_v1 = vadd.f32 %v2584_v37, %v3509_v11  ;;  %v1734_v21 = vpop.f32.mrb[15].mxu0 }
 0x1c3   : > { %2089 = vst.msk [vmem:[%s3534_s6 + $0x20] sm:$0xf] %vm2080_vm11, %v2423_v16  ;;  %v2424_v22 = vpack.c.bf16 %v1929_v29, %v1929_v29  ;;  %v1861_v42 = vmul.f32 %v2616_v36, %v3516_v20  ;;  %v2618_v44 = vadd.f32 %v1734_v21, %v3511_v12 }
 0x1c4   : > { %2092 = vst.msk [vmem:[%s3534_s6 + $0x2c] sm:$0xf] %vm2080_vm11, %v2426_v40  ;;  %v1902_v43 = vadd.f32 %v3522_v17, %v1863_v56  ;;  %v1864_v47 = vmul.f32 %v2617_v1, %v3516_v20 }
 0x1c5   : > { %2090 = vst.msk [vmem:[%s3534_s6 + $0x24] sm:$0xf] %vm2080_vm11, %v2424_v22  ;;  %v1900_v0 = vadd.f32 %v3522_v17, %v1861_v42  ;;  %v1862_v11 = vmul.f32 %v2618_v44, %v3516_v20 }
 0x1c6   : > { %v1934_v54 = vmax.f32 %v1902_v43, 0.0  ;;  %v1903_v3 = vadd.f32 %v3522_v17, %v1864_v47 }
 0x1c7   : > { %v1932_v12 = vmax.f32 %v1900_v0, 0.0  ;;  %v1901_v9 = vadd.f32 %v3522_v17, %v1862_v11  ;;  %v2587_v32 = vpop.f32.mrb[16].mxu0 }
 0x1c8   : > { %v2429_v34 = vpack.c.bf16 %v1934_v54, %v1934_v54  ;;  %v1935_v33 = vmax.f32 %v1903_v3, 0.0  ;;  %v1747_v38 = vpop.f32.mrb[17].mxu0 }
 0x1c9   : > { %v2427_v49 = vpack.c.bf16 %v1932_v12, %v1932_v12  ;;  %v1933_v58 = vmax.f32 %v1901_v9, 0.0  ;;  %v2588_v14 = vpop.f32.mrb[18].mxu0 }
 0x1ca   : > { %2095 = vst.msk [vmem:[%s3534_s6 + $0x38] sm:$0xf] %vm2080_vm11, %v2429_v34  ;;  %v2430_v25 = vpack.c.bf16 %v1935_v33, %v1935_v33  ;;  %v1750_v45 = vpop.f32.mrb[19].mxu0 }
 0x1cb   : > { %2093 = vst.msk [vmem:[%s3534_s6 + $0x30] sm:$0xf] %vm2080_vm11, %v2427_v49  ;;  %v2428_v46 = vpack.c.bf16 %v1933_v58, %v1933_v58 }
 0x1cc   : > { %2096 = vst.msk [vmem:[%s3534_s6 + $0x3c] sm:$0xf] %vm2080_vm11, %v2430_v25 }
 0x1cd   : > { %2094 = vst.msk [vmem:[%s3534_s6 + $0x34] sm:$0xf] %vm2080_vm11, %v2428_v46 }
 0x1cf   : > { %v2591_v13 = vpop.f32.mrb[20].mxu0 }
 0x1d0   : > { %v1763_v48 = vpop.f32.mrb[21].mxu0 }
 0x1d1   : > { %v2592_v60 = vpop.f32.mrb[22].mxu0 }
 0x1d2   : > { %v1766_v62 = vpop.f32.mrb[23].mxu0 }
 0x1d7   : > { %v2595_v41 = vpop.f32.mrb[24].mxu0 }
 0x1d8   : > { %v2553_v39 = vpop.f32.mrb[16].mxu1  ;;  %v1779_v7 = vpop.f32.mrb[25].mxu0 }
 0x1d9   : > { %v2619_v8 = vadd.f32 %v2587_v32, %v2553_v39  ;;  %v1573_v51 = vpop.f32.mrb[17].mxu1  ;;  %v2596_v52 = vpop.f32.mrb[26].mxu0 }
 0x1da   : > { %v2620_v10 = vadd.f32 %v1747_v38, %v1573_v51  ;;  %v2554_v57 = vpop.f32.mrb[18].mxu1  ;;  %v3600_v53 = vpop.f32.mrb[27].mxu0 }
 0x1db   : > { %v1867_v4 = vmul.f32 %v2619_v8, %v3516_v20  ;;  %v2621_v6 = vadd.f32 %v2588_v14, %v2554_v57  ;;  %v1576_v50 = vpop.f32.mrb[19].mxu1 }
 0x1dc   : > { %v1865_v18 = vmul.f32 %v2620_v10, %v3516_v20  ;;  %v2622_v59 = vadd.f32 %v1750_v45, %v1576_v50 }
 0x1dd   : > { %v1906_v63 = vadd.f32 %v3522_v17, %v1867_v4  ;;  %v1868_v2 = vmul.f32 %v2621_v6, %v3516_v20 }
 0x1de   : > { %v1904_v5 = vadd.f32 %v3522_v17, %v1865_v18  ;;  %v1866_v23 = vmul.f32 %v2622_v59, %v3516_v20 }
 0x1df   : > { %v1938_v24 = vmax.f32 %v1906_v63, 0.0  ;;  %v1907_v19 = vadd.f32 %v3522_v17, %v1868_v2  ;;  %v3609_v26 = vpop.f32.mrb[28].mxu0 }
 0x1e0   : > { %v1936_v27 = vmax.f32 %v1904_v5, 0.0  ;;  %v1905_v30 = vadd.f32 %v3522_v17, %v1866_v23  ;;  %v2557_v28 = vpop.f32.mrb[20].mxu1  ;;  %v3612_v31 = vpop.f32.mrb[29].mxu0 }
 0x1e1   : > { %v2433_v35 = vpack.c.bf16 %v1938_v24, %v1938_v24  ;;  %v1939_v55 = vmax.f32 %v1907_v19, 0.0  ;;  %v2623_v61 = vadd.f32 %v2591_v13, %v2557_v28  ;;  %v1589_v15 = vpop.f32.mrb[21].mxu1  ;;  %v3614_v16 = vpop.f32.mrb[30].mxu0 }
 0x1e2   : > { %v2431_v29 = vpack.c.bf16 %v1936_v27, %v1936_v27  ;;  %v1937_v36 = vmax.f32 %v1905_v30, 0.0  ;;  %v2624_v37 = vadd.f32 %v1763_v48, %v1589_v15  ;;  %v2558_v40 = vpop.f32.mrb[22].mxu1  ;;  %v3616_v56 = vpop.f32.mrb[31].mxu0 }
 0x1e3   : > { %2099 = vst.msk [vmem:[%s3534_s6 + $0x48] sm:$0xf] %vm2080_vm11, %v2433_v35  ;;  %v2434_v1 = vpack.c.bf16 %v1939_v55, %v1939_v55  ;;  %v1871_v21 = vmul.f32 %v2623_v61, %v3516_v20  ;;  %v2625_v22 = vadd.f32 %v2592_v60, %v2558_v40  ;;  %v1592_v42 = vpop.f32.mrb[23].mxu1 }
 0x1e4   : > { %2097 = vst.msk [vmem:[%s3534_s6 + $0x40] sm:$0xf] %vm2080_vm11, %v2431_v29  ;;  %v2432_v44 = vpack.c.bf16 %v1937_v36, %v1937_v36  ;;  %v1869_v43 = vmul.f32 %v2624_v37, %v3516_v20  ;;  %v2626_v47 = vadd.f32 %v1766_v62, %v1592_v42 }
 0x1e5   : > { %2100 = vst.msk [vmem:[%s3534_s6 + $0x4c] sm:$0xf] %vm2080_vm11, %v2434_v1  ;;  %v1910_v0 = vadd.f32 %v3522_v17, %v1871_v21  ;;  %v1872_v11 = vmul.f32 %v2625_v22, %v3516_v20 }
 0x1e6   : > { %2098 = vst.msk [vmem:[%s3534_s6 + $0x44] sm:$0xf] %vm2080_vm11, %v2432_v44  ;;  %v1908_v54 = vadd.f32 %v3522_v17, %v1869_v43  ;;  %v1870_v3 = vmul.f32 %v2626_v47, %v3516_v20 }
 0x1e7   : > { %v1942_v12 = vmax.f32 %v1910_v0, 0.0  ;;  %v1911_v9 = vadd.f32 %v3522_v17, %v1872_v11 }
 0x1e8   : > { %v1940_v32 = vmax.f32 %v1908_v54, 0.0  ;;  %v1909_v34 = vadd.f32 %v3522_v17, %v1870_v3  ;;  %v2561_v33 = vpop.f32.mrb[24].mxu1 }
 0x1e9   : > { %v2437_v38 = vpack.c.bf16 %v1942_v12, %v1942_v12  ;;  %v1943_v49 = vmax.f32 %v1911_v9, 0.0  ;;  %v2627_v58 = vadd.f32 %v2595_v41, %v2561_v33  ;;  %v1605_v14 = vpop.f32.mrb[25].mxu1 }
 0x1ea   : > { %v2435_v25 = vpack.c.bf16 %v1940_v32, %v1940_v32  ;;  %v1941_v45 = vmax.f32 %v1909_v34, 0.0  ;;  %v2628_v46 = vadd.f32 %v1779_v7, %v1605_v14  ;;  %v2562_v13 = vpop.f32.mrb[26].mxu1 }
 0x1eb   : > { %2103 = vst.msk [vmem:[%s3534_s6 + $0x58] sm:$0xf] %vm2080_vm11, %v2437_v38  ;;  %v2438_v48 = vpack.c.bf16 %v1943_v49, %v1943_v49  ;;  %v1875_v60 = vmul.f32 %v2627_v58, %v3516_v20  ;;  %v2629_v62 = vadd.f32 %v2596_v52, %v2562_v13  ;;  %v1608_v39 = vpop.f32.mrb[27].mxu1 }
 0x1ec   : > { %2101 = vst.msk [vmem:[%s3534_s6 + $0x50] sm:$0xf] %vm2080_vm11, %v2435_v25  ;;  %v2436_v8 = vpack.c.bf16 %v1941_v45, %v1941_v45  ;;  %v1873_v51 = vmul.f32 %v2628_v46, %v3516_v20  ;;  %v2630_v41 = vadd.f32 %v3600_v53, %v1608_v39 }
 0x1ed   : > { %2104 = vst.msk [vmem:[%s3534_s6 + $0x5c] sm:$0xf] %vm2080_vm11, %v2438_v48  ;;  %v1914_v10 = vadd.f32 %v3522_v17, %v1875_v60  ;;  %v1876_v7 = vmul.f32 %v2629_v62, %v3516_v20 }
 0x1ee   : > { %2102 = vst.msk [vmem:[%s3534_s6 + $0x54] sm:$0xf] %vm2080_vm11, %v2436_v8  ;;  %v1912_v57 = vadd.f32 %v3522_v17, %v1873_v51  ;;  %v1874_v52 = vmul.f32 %v2630_v41, %v3516_v20 }
 0x1ef   : > { %v1946_v4 = vmax.f32 %v1914_v10, 0.0  ;;  %v1915_v6 = vadd.f32 %v3522_v17, %v1876_v7 }
 0x1f0   : > { %v1944_v50 = vmax.f32 %v1912_v57, 0.0  ;;  %v1913_v53 = vadd.f32 %v3522_v17, %v1874_v52  ;;  %v2565_v18 = vpop.f32.mrb[28].mxu1 }
 0x1f1   : > { %v2441_v59 = vpack.c.bf16 %v1946_v4, %v1946_v4  ;;  %v1947_v63 = vmax.f32 %v1915_v6, 0.0  ;;  %v2631_v2 = vadd.f32 %v3609_v26, %v2565_v18  ;;  %v1621_v5 = vpop.f32.mrb[29].mxu1 }
 0x1f2   : > { %v2439_v23 = vpack.c.bf16 %v1944_v50, %v1944_v50  ;;  %v1945_v24 = vmax.f32 %v1913_v53, 0.0  ;;  %v2632_v19 = vadd.f32 %v3612_v31, %v1621_v5  ;;  %v2566_v27 = vpop.f32.mrb[30].mxu1 }
 0x1f3   : > { %2107 = vst.msk [vmem:[%s3534_s6 + $0x68] sm:$0xf] %vm2080_vm11, %v2441_v59  ;;  %v2442_v30 = vpack.c.bf16 %v1947_v63, %v1947_v63  ;;  %v1879_v28 = vmul.f32 %v2631_v2, %v3516_v20  ;;  %v2633_v35 = vadd.f32 %v3614_v16, %v2566_v27  ;;  %v1624_v55 = vpop.f32.mrb[31].mxu1 }
 0x1f4   : > { %2105 = vst.msk [vmem:[%s3534_s6 + $0x60] sm:$0xf] %vm2080_vm11, %v2439_v23  ;;  %v2440_v26 = vpack.c.bf16 %v1945_v24, %v1945_v24  ;;  %v1877_v61 = vmul.f32 %v2632_v19, %v3516_v20  ;;  %v2634_v15 = vadd.f32 %v3616_v56, %v1624_v55 }
 0x1f5   : > { %2108 = vst.msk [vmem:[%s3534_s6 + $0x6c] sm:$0xf] %vm2080_vm11, %v2442_v30  ;;  %v1918_v31 = vadd.f32 %v3522_v17, %v1879_v28  ;;  %v1880_v29 = vmul.f32 %v2633_v35, %v3516_v20 }
 0x1f6   : > { %2106 = vst.msk [vmem:[%s3534_s6 + $0x64] sm:$0xf] %vm2080_vm11, %v2440_v26  ;;  %v1916_v16 = vadd.f32 %v3522_v17, %v1877_v61  ;;  %v1878_v36 = vmul.f32 %v2634_v15, %v3516_v20 }
 0x1f7   : > { %v1950_v37 = vmax.f32 %v1918_v31, 0.0  ;;  %v1919_v40 = vadd.f32 %v3522_v17, %v1880_v29 }
 0x1f8   : > { %v1948_v56 = vmax.f32 %v1916_v16, 0.0  ;;  %v1917_v1 = vadd.f32 %v3522_v17, %v1878_v36 }
 0x1f9   : > { %v2445_v21 = vpack.c.bf16 %v1950_v37, %v1950_v37  ;;  %v1951_v22 = vmax.f32 %v1919_v40, 0.0 }
 0x1fa   : > { %v2443_v42 = vpack.c.bf16 %v1948_v56, %v1948_v56  ;;  %v1949_v44 = vmax.f32 %v1917_v1, 0.0 }
 0x1fb   : > { %2111 = vst.msk [vmem:[%s3534_s6 + $0x78] sm:$0xf] %vm2080_vm11, %v2445_v21  ;;  %v2446_v43 = vpack.c.bf16 %v1951_v22, %v1951_v22 }
 0x1fc   : > { %2109 = vst.msk [vmem:[%s3534_s6 + $0x70] sm:$0xf] %vm2080_vm11, %v2443_v42  ;;  %v2444_v20 = vpack.c.bf16 %v1949_v44, %v1949_v44 }
 0x1fd   : > { %2112 = vst.msk [vmem:[%s3534_s6 + $0x7c] sm:$0xf] %vm2080_vm11, %v2446_v43 }
 0x1fe   : > { %2110 = vst.msk [vmem:[%s3534_s6 + $0x74] sm:$0xf] %vm2080_vm11, %v2444_v20 }
 0x1ff   : > { %2768 = shalt.err (!%p2765_p5)
}
 0x200   : > { %s2769_s22 = scalar_lea.hbm %s3678_s11, 2048  ;;  %s2773_s29 = scalar_lea.hbm %s3740_s4, 4096 }
 0x201   : > { %p2770_p6 = scmp.ne.s32.totalorder %s3678_s11, %s2769_s22  ;;  %p2774_p10 = scmp.lt.u32.totalorder %s3678_s11, %s3740_s4 }
 0x202   : > { %p2775_p11 = scmp.lt.u32.totalorder %s2773_s29, %s2769_s22  ;;  %p2777_p13 = scmp.lt.u32.totalorder %s2769_s22, %s3678_s11 }
 0x203   : > { %p2771_p7 = pnand %p2770_p6, %p2906_p4 }
 0x204   : > { %p2776_p12 = por %p2775_p11, %p2774_p10 }
 0x205   : > { %p2772_p9 = pneg %p2771_p7 }
 0x206   : > { %p2778_p0 = por %p2777_p13, %p2776_p12 }
 0x208   : > { %p2779_p1 = pnand %p2778_p0, %p2772_p9 }
 0x20a   : > { %2782 = shalt.err (!%p2779_p1)
}
 0x20b   : > { %s2839_s6 = smov 64   ;;  %s2840_s7 = smov 4  }
 0x20c   : > { %2668 = dma.vmem_to_hbm [thread:$0]  (%p2906_p4), %s3680_s8, 2048, %s3678_s11, %s3690_s18, %s2839_s6, %s2839_s6, %s2840_s7  }
 0x20d PF: > { %p2674_p2 = scmp.ge.s32.totalorder %s2833_s20, 2  ;;  %s2143_s9 = sand.u32 1, %s2813_s15  }
 0x20e   : > { %s2144_s10 = scalar_lea.sflag [#allocation3], %s2143_s9 }
 0x20f   : > { %p2671_p3 = pnand %p2674_p2, %p2913_p8 }
 0x211   : > { %2808 = dma.done.wait (!%p2671_p3), %s2144_s10, 2048  }
 0x212   : > { %2810 = vsyncadd (!%p2671_p3), %s2144_s10, 4294965248  ;;  %s17_s20 = sadd.s32 1, %s2833_s20   ;;  %s3747_s15 = smov %s2817_s16 }
 0x213   : > { %p14_p5 = scmp.ge.s32.totalorder %s17_s20, 4   ;;  %s3748_s16 = smov %s2821_s17 }
 0x214   : > { %s3749_s17 = smov %s2919_s28  ;;  %s3750_s18 = smov %s2829_s19 }
 0x215   : > { %s3751_s19 = smov %s3753_s23  ;;  %16 = sbr.rel (!%p14_p5) target bundleno = 4 (0x4), region = 82 }
 0x21c   :  { %2149 = vsyncpa [#allocation3], 1 }
 0x21d   :  { %2151 = vsyncpa [#allocation3 + $0x1], 1 }

</bundles_post_ra>
